<compile_context>
chip_gen: v7x
topology: tpu7x:2x2x1
jax: 0.10.0
libtpu: 0.0.40
codegen_flags: <defaults>
</compile_context>

<pallas_src>
import functools
import math

import jax
import jax.numpy as jnp
from jax import lax
from jax.experimental import pallas as pl
from jax.experimental.pallas import tpu as pltpu


def _layer_norm(x, gamma, beta, eps):
    mean = jnp.mean(x, axis=-1, keepdims=True)
    c = x - mean
    var = jnp.mean(c * c, axis=-1, keepdims=True)
    inv = lax.rsqrt(var + eps)
    return c * inv * gamma + beta


def _encoder_layer_kernel(
    x_ref, mask_ref,
    wq_ref, bq_ref, wk_ref, bk_ref, wv_ref, bv_ref,
    wo_ref, bo_ref, g1_ref, be1_ref,
    w1_ref, b1_ref, w2_ref, b2_ref, g2_ref, be2_ref,
    out_ref, attn_ref,
    *, n_heads, d_k, d_v, scale, eps,
):
    f32 = jnp.float32
    bf16 = jnp.bfloat16
    S, d_model = x_ref.shape

    x = x_ref[...].astype(f32)                                     # (S, M)
    xb = jnp.broadcast_to(x.astype(bf16), (n_heads, S, d_model))   # (H, S, M)

    # --- QKV projections (bf16 MXU operands, f32 accumulation) ---
    q = jnp.einsum("hsm,hmd->hsd", xb, wq_ref[...],
                   preferred_element_type=f32) + bq_ref[...]
    k = jnp.einsum("hsm,hmd->hsd", xb, wk_ref[...],
                   preferred_element_type=f32) + bk_ref[...]
    v = jnp.einsum("hsm,hmd->hsd", xb, wv_ref[...],
                   preferred_element_type=f32) + bv_ref[...]
    q = q * scale                                                  # scale q, not the (S,S) scores

    # --- scaled dot-product attention, all heads at once ---
    scores = jnp.einsum("hqd,hkd->hqk", q.astype(bf16), k.astype(bf16),
                        preferred_element_type=f32)                # (H, S, S)
    m = mask_ref[...]                                              # (S, S) int8, 1 == masked
    scores = jnp.where(m[None, :, :] != 0, jnp.float32(-1e9), scores)

    mx = jnp.max(scores, axis=-1, keepdims=True)
    e = jnp.exp(scores - mx)
    denom = jnp.sum(e, axis=-1, keepdims=True)
    attn = e * pl.reciprocal(denom, approx=True)                   # (H, S, S)
    attn_ref[...] = attn.astype(attn_ref.dtype)

    ctx = jnp.einsum("hqk,hkd->hqd", attn.astype(bf16), v.astype(bf16),
                     preferred_element_type=f32)                   # (H, S, d_v)

    # --- output projection: concat(heads) @ Wo == sum_h ctx[h] @ Wo[h] ---
    o = jnp.einsum("hsd,hdm->hsm", ctx.astype(bf16), wo_ref[...],
                   preferred_element_type=f32).sum(axis=0)         # (S, M)
    o = o + bo_ref[...]

    # --- residual + LayerNorm 1 ---
    y1 = _layer_norm(o + x, g1_ref[...], be1_ref[...], eps)

    # --- position-wise FFN (Conv1d with kernel_size=1 == Linear) ---
    f1 = jnp.dot(y1.astype(bf16), w1_ref[...],
                 preferred_element_type=f32) + b1_ref[...]
    f1 = jnp.maximum(f1, 0.0)
    # TODO(synk): dropout is identity at inference; training-mode dropout omitted.
    f2 = jnp.dot(f1.astype(bf16), w2_ref[...],
                 preferred_element_type=f32) + b2_ref[...]

    # --- residual + LayerNorm 2 ---
    y2 = _layer_norm(f2 + y1, g2_ref[...], be2_ref[...], eps)
    out_ref[...] = y2.astype(out_ref.dtype)


def encoder_layer(x, attn_mask, params, *, n_heads, d_k, d_v, eps=1e-5):
    """x: [B,S,d_model] f32; attn_mask: [B,S,S] (True/nonzero == masked).
    Returns (enc_outputs [B,S,d_model], attn [B,n_heads,S,S])."""
    B, S, d_model = x.shape
    d_ff = params["w1"].shape[-1]
    bf16 = jnp.bfloat16

    mask_i8 = attn_mask.astype(jnp.int8)
    # matmul weights stored as bf16 (halved DMA); biases / LN params stay f32
    wq = params["wq"].astype(bf16)
    wk = params["wk"].astype(bf16)
    wv = params["wv"].astype(bf16)
    wo = params["wo"].astype(bf16)
    w1 = params["w1"].astype(bf16)
    w2 = params["w2"].astype(bf16)

    kernel = functools.partial(
        _encoder_layer_kernel,
        n_heads=n_heads, d_k=d_k, d_v=d_v,
        scale=1.0 / math.sqrt(d_k), eps=eps,
    )

    def full(shape):  # weight tile: same block every grid step (no re-DMA)
        return pl.BlockSpec(shape, lambda b: (0,) * len(shape))

    in_specs = [
        pl.BlockSpec((None, S, d_model), lambda b: (b, 0, 0)),   # x
        pl.BlockSpec((None, S, S), lambda b: (b, 0, 0)),         # mask (int8)
        full((n_heads, d_model, d_k)), full((n_heads, 1, d_k)),  # wq, bq
        full((n_heads, d_model, d_k)), full((n_heads, 1, d_k)),  # wk, bk
        full((n_heads, d_model, d_v)), full((n_heads, 1, d_v)),  # wv, bv
        full((n_heads, d_v, d_model)), full((1, d_model)),       # wo, bo
        full((1, d_model)), full((1, d_model)),                  # ln1 gamma, beta
        full((d_model, d_ff)), full((1, d_ff)),                  # ffn w1, b1
        full((d_ff, d_model)), full((1, d_model)),               # ffn w2, b2
        full((1, d_model)), full((1, d_model)),                  # ln2 gamma, beta
    ]
    out_specs = [
        pl.BlockSpec((None, S, d_model), lambda b: (b, 0, 0)),
        pl.BlockSpec((None, n_heads, S, S), lambda b: (b, 0, 0, 0)),
    ]
    out_shape = (
        jax.ShapeDtypeStruct((B, S, d_model), x.dtype),
        jax.ShapeDtypeStruct((B, n_heads, S, S), jnp.float32),
    )

    return pl.pallas_call(
        kernel,
        out_shape=out_shape,
        grid_spec=pltpu.PrefetchScalarGridSpec(
            num_scalar_prefetch=0,
            grid=(B,),
            in_specs=in_specs,
            out_specs=out_specs,
        ),
        compiler_params=pltpu.CompilerParams(
            dimension_semantics=("parallel",)
        ),
    )(x, mask_i8,
      wq, params["bq"], wk, params["bk"], wv, params["bv"],
      wo, params["bo"], params["g1"], params["be1"],
      w1, params["b1"], w2, params["b2"], params["g2"], params["be2"])


# ----------------------------- pure-JAX reference -----------------------------
def _reference(x, attn_mask, p, *, n_heads, d_k, d_v, eps=1e-5):
    q = jnp.einsum("bsm,hmd->bhsd", x, p["wq"]) + p["bq"][None]
    k = jnp.einsum("bsm,hmd->bhsd", x, p["wk"]) + p["bk"][None]
    v = jnp.einsum("bsm,hmd->bhsd", x, p["wv"]) + p["bv"][None]
    scores = jnp.einsum("bhqd,bhkd->bhqk", q, k) / math.sqrt(d_k)
    scores = jnp.where(attn_mask[:, None] != 0, -1e9, scores)
    attn = jax.nn.softmax(scores, axis=-1)
    ctx = jnp.einsum("bhqk,bhkd->bhqd", attn, v)
    o = jnp.einsum("bhsd,hdm->bsm", ctx, p["wo"]) + p["bo"]
    y1 = _layer_norm(o + x, p["g1"], p["be1"], eps)
    f1 = jax.nn.relu(jnp.einsum("bsm,mf->bsf", y1, p["w1"]) + p["b1"])
    f2 = jnp.einsum("bsf,fm->bsm", f1, p["w2"]) + p["b2"]
    y2 = _layer_norm(f2 + y1, p["g2"], p["be2"], eps)
    return y2, attn


if __name__ == "__main__":
    # cfg: d_model=32, n_heads=2, d_k=d_v=32, d_ff=64; batch=2, seq=8
    B, S, d_model, n_heads, d_k, d_v, d_ff = 2, 8, 32, 2, 32, 32, 64

    keys = jax.random.split(jax.random.PRNGKey(0), 16)
    nrm = lambda kk, shp, s=0.1: (s * jax.random.normal(kk, shp)).astype(jnp.float32)

    x = jax.random.normal(keys[0], (B, S, d_model), dtype=jnp.float32)
    attn_mask = jax.random.bernoulli(keys[1], p=0.2, shape=(B, S, S))

    params = dict(
        wq=nrm(keys[2], (n_heads, d_model, d_k)), bq=nrm(keys[3], (n_heads, 1, d_k)),
        wk=nrm(keys[4], (n_heads, d_model, d_k)), bk=nrm(keys[5], (n_heads, 1, d_k)),
        wv=nrm(keys[6], (n_heads, d_model, d_v)), bv=nrm(keys[7], (n_heads, 1, d_v)),
        wo=nrm(keys[8], (n_heads, d_v, d_model)), bo=nrm(keys[9], (1, d_model)),
        g1=jnp.ones((1, d_model), jnp.float32), be1=jnp.zeros((1, d_model), jnp.float32),
        w1=nrm(keys[10], (d_model, d_ff)), b1=nrm(keys[11], (1, d_ff)),
        w2=nrm(keys[12], (d_ff, d_model)), b2=nrm(keys[13], (1, d_model)),
        g2=jnp.ones((1, d_model), jnp.float32), be2=jnp.zeros((1, d_model), jnp.float32),
    )

    enc_out, attn = encoder_layer(x, attn_mask, params,
                                  n_heads=n_heads, d_k=d_k, d_v=d_v)
    jax.block_until_ready((enc_out, attn))

    enc_ref, attn_ref = _reference(x, attn_mask, params,
                                   n_heads=n_heads, d_k=d_k, d_v=d_v)

    # bf16 MXU operands + approx reciprocal -> loosened tolerances vs f32 ref
    assert jnp.allclose(enc_out, enc_ref, atol=5e-2, rtol=5e-2), (
        float(jnp.max(jnp.abs(enc_out - enc_ref))))
    assert jnp.allclose(attn, attn_ref, atol=3e-2, rtol=3e-2), (
        float(jnp.max(jnp.abs(attn - attn_ref))))

    print("KERNEL_OK")
</pallas_src>

<mosaic_0001>
module attributes {stable_mosaic.version = 11 : i64} {
  func.func @_encoder_layer_kernel(%arg0: i32, %arg1: memref<1x8x32xf32, #tpu.memory_space<vmem>>, %arg2: memref<1x8x8xi8, #tpu.memory_space<vmem>>, %arg3: memref<2x32x32xbf16, #tpu.memory_space<vmem>>, %arg4: memref<2x1x32xf32, #tpu.memory_space<vmem>>, %arg5: memref<2x32x32xbf16, #tpu.memory_space<vmem>>, %arg6: memref<2x1x32xf32, #tpu.memory_space<vmem>>, %arg7: memref<2x32x32xbf16, #tpu.memory_space<vmem>>, %arg8: memref<2x1x32xf32, #tpu.memory_space<vmem>>, %arg9: memref<2x32x32xbf16, #tpu.memory_space<vmem>>, %arg10: memref<1x32xf32, #tpu.memory_space<vmem>>, %arg11: memref<1x32xf32, #tpu.memory_space<vmem>>, %arg12: memref<1x32xf32, #tpu.memory_space<vmem>>, %arg13: memref<32x64xbf16, #tpu.memory_space<vmem>>, %arg14: memref<1x64xf32, #tpu.memory_space<vmem>>, %arg15: memref<64x32xbf16, #tpu.memory_space<vmem>>, %arg16: memref<1x32xf32, #tpu.memory_space<vmem>>, %arg17: memref<1x32xf32, #tpu.memory_space<vmem>>, %arg18: memref<1x32xf32, #tpu.memory_space<vmem>>, %arg19: memref<1x8x32xf32, #tpu.memory_space<vmem>>, %arg20: memref<1x2x8x8xf32, #tpu.memory_space<vmem>>) attributes {dimension_semantics = [#tpu.dimension_semantics<parallel>], iteration_bounds = array<i64: 2>, scalar_prefetch = 0 : i64, scratch_operands = 0 : i64, tpu.core_type = #tpu.core_type<tc>, window_params = [{transform_indices = @transform_0, window_bounds = array<i64: 1, 8, 32>}, {transform_indices = @transform_1, window_bounds = array<i64: 1, 8, 8>}, {pipeline_mode = #tpu.pipeline_mode<synchronous>, transform_indices = @transform_2, window_bounds = array<i64: 2, 32, 32>}, {pipeline_mode = #tpu.pipeline_mode<synchronous>, transform_indices = @transform_3, window_bounds = array<i64: 2, 1, 32>}, {pipeline_mode = #tpu.pipeline_mode<synchronous>, transform_indices = @transform_4, window_bounds = array<i64: 2, 32, 32>}, {pipeline_mode = #tpu.pipeline_mode<synchronous>, transform_indices = @transform_5, window_bounds = array<i64: 2, 1, 32>}, {pipeline_mode = #tpu.pipeline_mode<synchronous>, transform_indices = @transform_6, window_bounds = array<i64: 2, 32, 32>}, {pipeline_mode = #tpu.pipeline_mode<synchronous>, transform_indices = @transform_7, window_bounds = array<i64: 2, 1, 32>}, {pipeline_mode = #tpu.pipeline_mode<synchronous>, transform_indices = @transform_8, window_bounds = array<i64: 2, 32, 32>}, {pipeline_mode = #tpu.pipeline_mode<synchronous>, transform_indices = @transform_9, window_bounds = array<i64: 1, 32>}, {pipeline_mode = #tpu.pipeline_mode<synchronous>, transform_indices = @transform_10, window_bounds = array<i64: 1, 32>}, {pipeline_mode = #tpu.pipeline_mode<synchronous>, transform_indices = @transform_11, window_bounds = array<i64: 1, 32>}, {pipeline_mode = #tpu.pipeline_mode<synchronous>, transform_indices = @transform_12, window_bounds = array<i64: 32, 64>}, {pipeline_mode = #tpu.pipeline_mode<synchronous>, transform_indices = @transform_13, window_bounds = array<i64: 1, 64>}, {pipeline_mode = #tpu.pipeline_mode<synchronous>, transform_indices = @transform_14, window_bounds = array<i64: 64, 32>}, {pipeline_mode = #tpu.pipeline_mode<synchronous>, transform_indices = @transform_15, window_bounds = array<i64: 1, 32>}, {pipeline_mode = #tpu.pipeline_mode<synchronous>, transform_indices = @transform_16, window_bounds = array<i64: 1, 32>}, {pipeline_mode = #tpu.pipeline_mode<synchronous>, transform_indices = @transform_17, window_bounds = array<i64: 1, 32>}, {transform_indices = @transform_18, window_bounds = array<i64: 1, 8, 32>}, {transform_indices = @transform_19, window_bounds = array<i64: 1, 2, 8, 8>}]} {
    %c0 = arith.constant 0 : index
    %c0_0 = arith.constant 0 : index
    %c0_1 = arith.constant 0 : index
    %0 = vector.load %arg1[%c0, %c0_0, %c0_1] : memref<1x8x32xf32, #tpu.memory_space<vmem>>, vector<1x8x32xf32>
    %1 = vector.shape_cast %0 : vector<1x8x32xf32> to vector<8x32xf32>
    %2 = arith.truncf %1 : vector<8x32xf32> to vector<8x32xbf16>
    %3 = vector.shape_cast %2 : vector<8x32xbf16> to vector<1x8x32xbf16>
    %4 = vector.broadcast %3 : vector<1x8x32xbf16> to vector<2x8x32xbf16>
    %c0_2 = arith.constant 0 : index
    %c0_3 = arith.constant 0 : index
    %c0_4 = arith.constant 0 : index
    %5 = vector.load %arg3[%c0_2, %c0_3, %c0_4] : memref<2x32x32xbf16, #tpu.memory_space<vmem>>, vector<2x32x32xbf16>
    "tpu.trace_start"() <{level = 10 : i32, message = "hsm,hmd->hsd"}> : () -> ()
    %cst = arith.constant dense<0.000000e+00> : vector<2x8x32xf32>
    %6 = tpu.matmul %4, %5, %cst {dimension_numbers = #tpu.dot_dimension_numbers<[2], [1], [1], [2], [0, 0, 0, 1, 1, 2], [0], [0]>} : vector<2x8x32xbf16>, vector<2x32x32xbf16>, vector<2x8x32xf32> -> vector<2x8x32xf32>
    "tpu.trace_stop"() : () -> ()
    %c0_5 = arith.constant 0 : index
    %c0_6 = arith.constant 0 : index
    %c0_7 = arith.constant 0 : index
    %7 = vector.load %arg4[%c0_5, %c0_6, %c0_7] : memref<2x1x32xf32, #tpu.memory_space<vmem>>, vector<2x1x32xf32>
    %8 = vector.broadcast %7 : vector<2x1x32xf32> to vector<2x8x32xf32>
    %9 = arith.addf %6, %8 : vector<2x8x32xf32>
    %c0_8 = arith.constant 0 : index
    %c0_9 = arith.constant 0 : index
    %c0_10 = arith.constant 0 : index
    %10 = vector.load %arg5[%c0_8, %c0_9, %c0_10] : memref<2x32x32xbf16, #tpu.memory_space<vmem>>, vector<2x32x32xbf16>
    "tpu.trace_start"() <{level = 10 : i32, message = "hsm,hmd->hsd"}> : () -> ()
    %cst_11 = arith.constant dense<0.000000e+00> : vector<2x8x32xf32>
    %11 = tpu.matmul %4, %10, %cst_11 {dimension_numbers = #tpu.dot_dimension_numbers<[2], [1], [1], [2], [0, 0, 0, 1, 1, 2], [0], [0]>} : vector<2x8x32xbf16>, vector<2x32x32xbf16>, vector<2x8x32xf32> -> vector<2x8x32xf32>
    "tpu.trace_stop"() : () -> ()
    %c0_12 = arith.constant 0 : index
    %c0_13 = arith.constant 0 : index
    %c0_14 = arith.constant 0 : index
    %12 = vector.load %arg6[%c0_12, %c0_13, %c0_14] : memref<2x1x32xf32, #tpu.memory_space<vmem>>, vector<2x1x32xf32>
    %13 = vector.broadcast %12 : vector<2x1x32xf32> to vector<2x8x32xf32>
    %14 = arith.addf %11, %13 : vector<2x8x32xf32>
    %c0_15 = arith.constant 0 : index
    %c0_16 = arith.constant 0 : index
    %c0_17 = arith.constant 0 : index
    %15 = vector.load %arg7[%c0_15, %c0_16, %c0_17] : memref<2x32x32xbf16, #tpu.memory_space<vmem>>, vector<2x32x32xbf16>
    "tpu.trace_start"() <{level = 10 : i32, message = "hsm,hmd->hsd"}> : () -> ()
    %cst_18 = arith.constant dense<0.000000e+00> : vector<2x8x32xf32>
    %16 = tpu.matmul %4, %15, %cst_18 {dimension_numbers = #tpu.dot_dimension_numbers<[2], [1], [1], [2], [0, 0, 0, 1, 1, 2], [0], [0]>} : vector<2x8x32xbf16>, vector<2x32x32xbf16>, vector<2x8x32xf32> -> vector<2x8x32xf32>
    "tpu.trace_stop"() : () -> ()
    %c0_19 = arith.constant 0 : index
    %c0_20 = arith.constant 0 : index
    %c0_21 = arith.constant 0 : index
    %17 = vector.load %arg8[%c0_19, %c0_20, %c0_21] : memref<2x1x32xf32, #tpu.memory_space<vmem>>, vector<2x1x32xf32>
    %18 = vector.broadcast %17 : vector<2x1x32xf32> to vector<2x8x32xf32>
    %19 = arith.addf %16, %18 : vector<2x8x32xf32>
    %cst_22 = arith.constant 0.176776692 : f32
    %20 = vector.broadcast %cst_22 : f32 to vector<2x8x32xf32>
    %21 = arith.mulf %9, %20 : vector<2x8x32xf32>
    %22 = arith.truncf %21 : vector<2x8x32xf32> to vector<2x8x32xbf16>
    %23 = arith.truncf %14 : vector<2x8x32xf32> to vector<2x8x32xbf16>
    "tpu.trace_start"() <{level = 10 : i32, message = "hqd,hkd->hqk"}> : () -> ()
    %cst_23 = arith.constant dense<0.000000e+00> : vector<2x8x8xf32>
    %24 = tpu.matmul %22, %23, %cst_23 {dimension_numbers = #tpu.dot_dimension_numbers<[2], [2], [1], [1], [0, 0, 0, 1, 1, 1], [0], [0]>} : vector<2x8x32xbf16>, vector<2x8x32xbf16>, vector<2x8x8xf32> -> vector<2x8x8xf32>
    "tpu.trace_stop"() : () -> ()
    %c0_24 = arith.constant 0 : index
    %c0_25 = arith.constant 0 : index
    %c0_26 = arith.constant 0 : index
    %25 = vector.load %arg2[%c0_24, %c0_25, %c0_26] : memref<1x8x8xi8, #tpu.memory_space<vmem>>, vector<1x8x8xi8>
    %26 = vector.shape_cast %25 : vector<1x8x8xi8> to vector<8x8xi8>
    %27 = vector.shape_cast %26 : vector<8x8xi8> to vector<1x8x8xi8>
    %c0_i8 = arith.constant 0 : i8
    %28 = vector.broadcast %c0_i8 : i8 to vector<1x8x8xi8>
    %29 = arith.cmpi ne, %27, %28 : vector<1x8x8xi8>
    %cst_27 = arith.constant -1.000000e+09 : f32
    %30 = vector.shape_cast %29 : vector<1x8x8xi1> to vector<1x8x8xi1>
    %31 = vector.broadcast %30 : vector<1x8x8xi1> to vector<2x8x8xi1>
    %32 = vector.broadcast %cst_27 : f32 to vector<2x8x8xf32>
    %33 = arith.select %31, %32, %24 : vector<2x8x8xi1>, vector<2x8x8xf32>
    %cst_28 = arith.constant dense<0xFF800000> : vector<2x8xf32>
    %34 = vector.multi_reduction <maximumf>, %33, %cst_28 [2] : vector<2x8x8xf32> to vector<2x8xf32>
    %35 = vector.shape_cast %34 : vector<2x8xf32> to vector<2x8x1xf32>
    %36 = vector.broadcast %35 : vector<2x8x1xf32> to vector<2x8x8xf32>
    %37 = arith.subf %33, %36 : vector<2x8x8xf32>
    %38 = math.exp %37 : vector<2x8x8xf32>
    %cst_29 = arith.constant dense<0.000000e+00> : vector<2x8xf32>
    %39 = vector.multi_reduction <add>, %38, %cst_29 [2] : vector<2x8x8xf32> to vector<2x8xf32>
    %40 = vector.shape_cast %39 : vector<2x8xf32> to vector<2x8x1xf32>
    %41 = tpu.reciprocal %40 {approx = true} : vector<2x8x1xf32> -> vector<2x8x1xf32>
    %42 = vector.broadcast %41 : vector<2x8x1xf32> to vector<2x8x8xf32>
    %43 = arith.mulf %38, %42 : vector<2x8x8xf32>
    %c0_30 = arith.constant 0 : index
    %c0_31 = arith.constant 0 : index
    %c0_32 = arith.constant 0 : index
    %c0_33 = arith.constant 0 : index
    %44 = vector.load %arg20[%c0_30, %c0_31, %c0_32, %c0_33] : memref<1x2x8x8xf32, #tpu.memory_space<vmem>>, vector<1x2x8x8xf32>
    %45 = vector.shape_cast %44 : vector<1x2x8x8xf32> to vector<2x8x8xf32>
    %46 = vector.shape_cast %43 : vector<2x8x8xf32> to vector<1x2x8x8xf32>
    tpu.vector_store %arg20[%c0_30, %c0_31, %c0_32, %c0_33], %46 {strides = array<i32>} : memref<1x2x8x8xf32, #tpu.memory_space<vmem>>, vector<1x2x8x8xf32>,
    %47 = arith.truncf %43 : vector<2x8x8xf32> to vector<2x8x8xbf16>
    %48 = arith.truncf %19 : vector<2x8x32xf32> to vector<2x8x32xbf16>
    "tpu.trace_start"() <{level = 10 : i32, message = "hqk,hkd->hqd"}> : () -> ()
    %cst_34 = arith.constant dense<0.000000e+00> : vector<2x8x32xf32>
    %49 = tpu.matmul %47, %48, %cst_34 {dimension_numbers = #tpu.dot_dimension_numbers<[2], [1], [1], [2], [0, 0, 0, 1, 1, 2], [0], [0]>} : vector<2x8x8xbf16>, vector<2x8x32xbf16>, vector<2x8x32xf32> -> vector<2x8x32xf32>
    "tpu.trace_stop"() : () -> ()
    %50 = arith.truncf %49 : vector<2x8x32xf32> to vector<2x8x32xbf16>
    %c0_35 = arith.constant 0 : index
    %c0_36 = arith.constant 0 : index
    %c0_37 = arith.constant 0 : index
    %51 = vector.load %arg9[%c0_35, %c0_36, %c0_37] : memref<2x32x32xbf16, #tpu.memory_space<vmem>>, vector<2x32x32xbf16>
    "tpu.trace_start"() <{level = 10 : i32, message = "hsd,hdm->hsm"}> : () -> ()
    %cst_38 = arith.constant dense<0.000000e+00> : vector<2x8x32xf32>
    %52 = tpu.matmul %50, %51, %cst_38 {dimension_numbers = #tpu.dot_dimension_numbers<[2], [1], [1], [2], [0, 0, 0, 1, 1, 2], [0], [0]>} : vector<2x8x32xbf16>, vector<2x32x32xbf16>, vector<2x8x32xf32> -> vector<2x8x32xf32>
    "tpu.trace_stop"() : () -> ()
    %cst_39 = arith.constant dense<0.000000e+00> : vector<8x32xf32>
    %53 = vector.multi_reduction <add>, %52, %cst_39 [0] : vector<2x8x32xf32> to vector<8x32xf32>
    %c0_40 = arith.constant 0 : index
    %c0_41 = arith.constant 0 : index
    %54 = vector.load %arg10[%c0_40, %c0_41] : memref<1x32xf32, #tpu.memory_space<vmem>>, vector<1x32xf32>
    %55 = vector.broadcast %54 : vector<1x32xf32> to vector<8x32xf32>
    %56 = arith.addf %53, %55 : vector<8x32xf32>
    %57 = arith.addf %56, %1 : vector<8x32xf32>
    %c0_42 = arith.constant 0 : index
    %c0_43 = arith.constant 0 : index
    %58 = vector.load %arg11[%c0_42, %c0_43] : memref<1x32xf32, #tpu.memory_space<vmem>>, vector<1x32xf32>
    %c0_44 = arith.constant 0 : index
    %c0_45 = arith.constant 0 : index
    %59 = vector.load %arg12[%c0_44, %c0_45] : memref<1x32xf32, #tpu.memory_space<vmem>>, vector<1x32xf32>
    %cst_46 = arith.constant dense<0.000000e+00> : vector<8xf32>
    %60 = vector.multi_reduction <add>, %57, %cst_46 [1] : vector<8x32xf32> to vector<8xf32>
    %61 = vector.shape_cast %60 : vector<8xf32> to vector<8x1xf32>
    %cst_47 = arith.constant 3.200000e+01 : f32
    %62 = vector.broadcast %cst_47 : f32 to vector<8x1xf32>
    %63 = arith.divf %61, %62 : vector<8x1xf32>
    %64 = vector.broadcast %63 : vector<8x1xf32> to vector<8x32xf32>
    %65 = arith.subf %57, %64 : vector<8x32xf32>
    %66 = arith.mulf %65, %65 : vector<8x32xf32>
    %cst_48 = arith.constant dense<0.000000e+00> : vector<8xf32>
    %67 = vector.multi_reduction <add>, %66, %cst_48 [1] : vector<8x32xf32> to vector<8xf32>
    %68 = vector.shape_cast %67 : vector<8xf32> to vector<8x1xf32>
    %cst_49 = arith.constant 3.200000e+01 : f32
    %69 = vector.broadcast %cst_49 : f32 to vector<8x1xf32>
    %70 = arith.divf %68, %69 : vector<8x1xf32>
    %cst_50 = arith.constant 9.99999974E-6 : f32
    %71 = vector.broadcast %cst_50 : f32 to vector<8x1xf32>
    %72 = arith.addf %70, %71 : vector<8x1xf32>
    %73 = math.rsqrt %72 : vector<8x1xf32>
    %74 = vector.broadcast %73 : vector<8x1xf32> to vector<8x32xf32>
    %75 = arith.mulf %65, %74 : vector<8x32xf32>
    %76 = vector.broadcast %58 : vector<1x32xf32> to vector<8x32xf32>
    %77 = arith.mulf %75, %76 : vector<8x32xf32>
    %78 = vector.broadcast %59 : vector<1x32xf32> to vector<8x32xf32>
    %79 = arith.addf %77, %78 : vector<8x32xf32>
    %80 = arith.truncf %79 : vector<8x32xf32> to vector<8x32xbf16>
    %c0_51 = arith.constant 0 : index
    %c0_52 = arith.constant 0 : index
    %81 = vector.load %arg13[%c0_51, %c0_52] : memref<32x64xbf16, #tpu.memory_space<vmem>>, vector<32x64xbf16>
    %cst_53 = arith.constant dense<0.000000e+00> : vector<8x64xf32>
    %82 = tpu.matmul %80, %81, %cst_53 {dimension_numbers = #tpu.dot_dimension_numbers<[1], [0], [0], [1], [0, 0, 1, 1], [], []>} : vector<8x32xbf16>, vector<32x64xbf16>, vector<8x64xf32> -> vector<8x64xf32>
    %c0_54 = arith.constant 0 : index
    %c0_55 = arith.constant 0 : index
    %83 = vector.load %arg14[%c0_54, %c0_55] : memref<1x64xf32, #tpu.memory_space<vmem>>, vector<1x64xf32>
    %84 = vector.broadcast %83 : vector<1x64xf32> to vector<8x64xf32>
    %85 = arith.addf %82, %84 : vector<8x64xf32>
    %cst_56 = arith.constant 0.000000e+00 : f32
    %86 = vector.broadcast %cst_56 : f32 to vector<8x64xf32>
    %87 = arith.maximumf %85, %86 : vector<8x64xf32>
    %88 = arith.truncf %87 : vector<8x64xf32> to vector<8x64xbf16>
    %c0_57 = arith.constant 0 : index
    %c0_58 = arith.constant 0 : index
    %89 = vector.load %arg15[%c0_57, %c0_58] : memref<64x32xbf16, #tpu.memory_space<vmem>>, vector<64x32xbf16>
    %cst_59 = arith.constant dense<0.000000e+00> : vector<8x32xf32>
    %90 = tpu.matmul %88, %89, %cst_59 {dimension_numbers = #tpu.dot_dimension_numbers<[1], [0], [0], [1], [0, 0, 1, 1], [], []>} : vector<8x64xbf16>, vector<64x32xbf16>, vector<8x32xf32> -> vector<8x32xf32>
    %c0_60 = arith.constant 0 : index
    %c0_61 = arith.constant 0 : index
    %91 = vector.load %arg16[%c0_60, %c0_61] : memref<1x32xf32, #tpu.memory_space<vmem>>, vector<1x32xf32>
    %92 = vector.broadcast %91 : vector<1x32xf32> to vector<8x32xf32>
    %93 = arith.addf %90, %92 : vector<8x32xf32>
    %94 = arith.addf %93, %79 : vector<8x32xf32>
    %c0_62 = arith.constant 0 : index
    %c0_63 = arith.constant 0 : index
    %95 = vector.load %arg17[%c0_62, %c0_63] : memref<1x32xf32, #tpu.memory_space<vmem>>, vector<1x32xf32>
    %c0_64 = arith.constant 0 : index
    %c0_65 = arith.constant 0 : index
    %96 = vector.load %arg18[%c0_64, %c0_65] : memref<1x32xf32, #tpu.memory_space<vmem>>, vector<1x32xf32>
    %cst_66 = arith.constant dense<0.000000e+00> : vector<8xf32>
    %97 = vector.multi_reduction <add>, %94, %cst_66 [1] : vector<8x32xf32> to vector<8xf32>
    %98 = vector.shape_cast %97 : vector<8xf32> to vector<8x1xf32>
    %cst_67 = arith.constant 3.200000e+01 : f32
    %99 = vector.broadcast %cst_67 : f32 to vector<8x1xf32>
    %100 = arith.divf %98, %99 : vector<8x1xf32>
    %101 = vector.broadcast %100 : vector<8x1xf32> to vector<8x32xf32>
    %102 = arith.subf %94, %101 : vector<8x32xf32>
    %103 = arith.mulf %102, %102 : vector<8x32xf32>
    %cst_68 = arith.constant dense<0.000000e+00> : vector<8xf32>
    %104 = vector.multi_reduction <add>, %103, %cst_68 [1] : vector<8x32xf32> to vector<8xf32>
    %105 = vector.shape_cast %104 : vector<8xf32> to vector<8x1xf32>
    %cst_69 = arith.constant 3.200000e+01 : f32
    %106 = vector.broadcast %cst_69 : f32 to vector<8x1xf32>
    %107 = arith.divf %105, %106 : vector<8x1xf32>
    %cst_70 = arith.constant 9.99999974E-6 : f32
    %108 = vector.broadcast %cst_70 : f32 to vector<8x1xf32>
    %109 = arith.addf %107, %108 : vector<8x1xf32>
    %110 = math.rsqrt %109 : vector<8x1xf32>
    %111 = vector.broadcast %110 : vector<8x1xf32> to vector<8x32xf32>
    %112 = arith.mulf %102, %111 : vector<8x32xf32>
    %113 = vector.broadcast %95 : vector<1x32xf32> to vector<8x32xf32>
    %114 = arith.mulf %112, %113 : vector<8x32xf32>
    %115 = vector.broadcast %96 : vector<1x32xf32> to vector<8x32xf32>
    %116 = arith.addf %114, %115 : vector<8x32xf32>
    %c0_71 = arith.constant 0 : index
    %c0_72 = arith.constant 0 : index
    %c0_73 = arith.constant 0 : index
    %117 = vector.load %arg19[%c0_71, %c0_72, %c0_73] : memref<1x8x32xf32, #tpu.memory_space<vmem>>, vector<1x8x32xf32>
    %118 = vector.shape_cast %117 : vector<1x8x32xf32> to vector<8x32xf32>
    %119 = vector.shape_cast %116 : vector<8x32xf32> to vector<1x8x32xf32>
    tpu.vector_store %arg19[%c0_71, %c0_72, %c0_73], %119 {strides = array<i32>} : memref<1x8x32xf32, #tpu.memory_space<vmem>>, vector<1x8x32xf32>,
    return
  }
  func.func @transform_0(%arg0: i32) -> (i32, i32, i32) {
    %c0_i32 = arith.constant 0 : i32
    %c0_i32_0 = arith.constant 0 : i32
    %c0_i32_1 = arith.constant 0 : i32
    return %arg0, %c0_i32, %c0_i32_0 : i32, i32, i32
  }
  func.func @transform_1(%arg0: i32) -> (i32, i32, i32) {
    %c0_i32 = arith.constant 0 : i32
    %c0_i32_0 = arith.constant 0 : i32
    %c0_i32_1 = arith.constant 0 : i32
    return %arg0, %c0_i32, %c0_i32_0 : i32, i32, i32
  }
  func.func @transform_2(%arg0: i32) -> (i32, i32, i32) {
    %c0_i32 = arith.constant 0 : i32
    %c0_i32_0 = arith.constant 0 : i32
    %c0_i32_1 = arith.constant 0 : i32
    %c0_i32_2 = arith.constant 0 : i32
    return %c0_i32, %c0_i32_0, %c0_i32_1 : i32, i32, i32
  }
  func.func @transform_3(%arg0: i32) -> (i32, i32, i32) {
    %c0_i32 = arith.constant 0 : i32
    %c0_i32_0 = arith.constant 0 : i32
    %c0_i32_1 = arith.constant 0 : i32
    %c0_i32_2 = arith.constant 0 : i32
    return %c0_i32, %c0_i32_0, %c0_i32_1 : i32, i32, i32
  }
  func.func @transform_4(%arg0: i32) -> (i32, i32, i32) {
    %c0_i32 = arith.constant 0 : i32
    %c0_i32_0 = arith.constant 0 : i32
    %c0_i32_1 = arith.constant 0 : i32
    %c0_i32_2 = arith.constant 0 : i32
    return %c0_i32, %c0_i32_0, %c0_i32_1 : i32, i32, i32
  }
  func.func @transform_5(%arg0: i32) -> (i32, i32, i32) {
    %c0_i32 = arith.constant 0 : i32
    %c0_i32_0 = arith.constant 0 : i32
    %c0_i32_1 = arith.constant 0 : i32
    %c0_i32_2 = arith.constant 0 : i32
    return %c0_i32, %c0_i32_0, %c0_i32_1 : i32, i32, i32
  }
  func.func @transform_6(%arg0: i32) -> (i32, i32, i32) {
    %c0_i32 = arith.constant 0 : i32
    %c0_i32_0 = arith.constant 0 : i32
    %c0_i32_1 = arith.constant 0 : i32
    %c0_i32_2 = arith.constant 0 : i32
    return %c0_i32, %c0_i32_0, %c0_i32_1 : i32, i32, i32
  }
  func.func @transform_7(%arg0: i32) -> (i32, i32, i32) {
    %c0_i32 = arith.constant 0 : i32
    %c0_i32_0 = arith.constant 0 : i32
    %c0_i32_1 = arith.constant 0 : i32
    %c0_i32_2 = arith.constant 0 : i32
    return %c0_i32, %c0_i32_0, %c0_i32_1 : i32, i32, i32
  }
  func.func @transform_8(%arg0: i32) -> (i32, i32, i32) {
    %c0_i32 = arith.constant 0 : i32
    %c0_i32_0 = arith.constant 0 : i32
    %c0_i32_1 = arith.constant 0 : i32
    %c0_i32_2 = arith.constant 0 : i32
    return %c0_i32, %c0_i32_0, %c0_i32_1 : i32, i32, i32
  }
  func.func @transform_9(%arg0: i32) -> (i32, i32) {
    %c0_i32 = arith.constant 0 : i32
    %c0_i32_0 = arith.constant 0 : i32
    %c0_i32_1 = arith.constant 0 : i32
    return %c0_i32, %c0_i32_0 : i32, i32
  }
  func.func @transform_10(%arg0: i32) -> (i32, i32) {
    %c0_i32 = arith.constant 0 : i32
    %c0_i32_0 = arith.constant 0 : i32
    %c0_i32_1 = arith.constant 0 : i32
    return %c0_i32, %c0_i32_0 : i32, i32
  }
  func.func @transform_11(%arg0: i32) -> (i32, i32) {
    %c0_i32 = arith.constant 0 : i32
    %c0_i32_0 = arith.constant 0 : i32
    %c0_i32_1 = arith.constant 0 : i32
    return %c0_i32, %c0_i32_0 : i32, i32
  }
  func.func @transform_12(%arg0: i32) -> (i32, i32) {
    %c0_i32 = arith.constant 0 : i32
    %c0_i32_0 = arith.constant 0 : i32
    %c0_i32_1 = arith.constant 0 : i32
    return %c0_i32, %c0_i32_0 : i32, i32
  }
  func.func @transform_13(%arg0: i32) -> (i32, i32) {
    %c0_i32 = arith.constant 0 : i32
    %c0_i32_0 = arith.constant 0 : i32
    %c0_i32_1 = arith.constant 0 : i32
    return %c0_i32, %c0_i32_0 : i32, i32
  }
  func.func @transform_14(%arg0: i32) -> (i32, i32) {
    %c0_i32 = arith.constant 0 : i32
    %c0_i32_0 = arith.constant 0 : i32
    %c0_i32_1 = arith.constant 0 : i32
    return %c0_i32, %c0_i32_0 : i32, i32
  }
  func.func @transform_15(%arg0: i32) -> (i32, i32) {
    %c0_i32 = arith.constant 0 : i32
    %c0_i32_0 = arith.constant 0 : i32
    %c0_i32_1 = arith.constant 0 : i32
    return %c0_i32, %c0_i32_0 : i32, i32
  }
  func.func @transform_16(%arg0: i32) -> (i32, i32) {
    %c0_i32 = arith.constant 0 : i32
    %c0_i32_0 = arith.constant 0 : i32
    %c0_i32_1 = arith.constant 0 : i32
    return %c0_i32, %c0_i32_0 : i32, i32
  }
  func.func @transform_17(%arg0: i32) -> (i32, i32) {
    %c0_i32 = arith.constant 0 : i32
    %c0_i32_0 = arith.constant 0 : i32
    %c0_i32_1 = arith.constant 0 : i32
    return %c0_i32, %c0_i32_0 : i32, i32
  }
  func.func @transform_18(%arg0: i32) -> (i32, i32, i32) {
    %c0_i32 = arith.constant 0 : i32
    %c0_i32_0 = arith.constant 0 : i32
    %c0_i32_1 = arith.constant 0 : i32
    return %arg0, %c0_i32, %c0_i32_0 : i32, i32, i32
  }
  func.func @transform_19(%arg0: i32) -> (i32, i32, i32, i32) {
    %c0_i32 = arith.constant 0 : i32
    %c0_i32_0 = arith.constant 0 : i32
    %c0_i32_1 = arith.constant 0 : i32
    %c0_i32_2 = arith.constant 0 : i32
    return %arg0, %c0_i32, %c0_i32_0, %c0_i32_1 : i32, i32, i32, i32
  }
}

</mosaic_0001>

<bundles_post_ra>
// kernel: tpu_custom_call.1
= control target key start
LH: loop header
LB: loop body
LE: loop exit
PB: predicated region body
PF: predicated region fallthrough
CT: control target
= control target key end

     0   :  { %s3356_s0 = inlined_call_operand.hbm [shape: f32[2,8,32], index: 0, kind: input, shape index: {}]   ;;  %s3357_s1 = inlined_call_operand.hbm [shape: s8[2,8,8], index: 1, kind: input, shape index: {}]   ;;  %s3358_s2 = inlined_call_operand.vmem [shape: bf16[2,32,32], index: 2, kind: input, shape index: {}]   ;;  %s3359_s3 = inlined_call_operand.vmem [shape: f32[2,1,32], index: 3, kind: input, shape index: {}]   ;;  %s3360_s4 = inlined_call_operand.hbm [shape: bf16[2,32,32], index: 4, kind: input, shape index: {}]   ;;  %s3361_s5 = inlined_call_operand.hbm [shape: f32[2,1,32], index: 5, kind: input, shape index: {}]   ;;  %s3362_s6 = inlined_call_operand.vmem [shape: bf16[2,32,32], index: 6, kind: input, shape index: {}]   ;;  %s3363_s7 = inlined_call_operand.hbm [shape: f32[2,1,32], index: 7, kind: input, shape index: {}]   ;;  %s3364_s8 = inlined_call_operand.hbm [shape: bf16[2,32,32], index: 8, kind: input, shape index: {}]   ;;  %s3365_s9 = inlined_call_operand.hbm [shape: f32[1,32], index: 9, kind: input, shape index: {}]   ;;  %s3366_s10 = inlined_call_operand.vmem [shape: f32[1,32], index: 10, kind: input, shape index: {}]   ;;  %s3367_s11 = inlined_call_operand.vmem [shape: f32[1,32], index: 11, kind: input, shape index: {}]   ;;  %s3368_s12 = inlined_call_operand.hbm [shape: bf16[32,64], index: 12, kind: input, shape index: {}]   ;;  %s3369_s13 = inlined_call_operand.vmem [shape: f32[1,64], index: 13, kind: input, shape index: {}]   ;;  %s3370_s14 = inlined_call_operand.vmem [shape: bf16[64,32], index: 14, kind: input, shape index: {}]   ;;  %s3371_s15 = inlined_call_operand.vmem [shape: f32[1,32], index: 15, kind: input, shape index: {}]   ;;  %s3372_s16 = inlined_call_operand.vmem [shape: f32[1,32], index: 16, kind: input, shape index: {}]   ;;  %s3373_s17 = inlined_call_operand.vmem [shape: f32[1,32], index: 17, kind: input, shape index: {}]   ;;  %s3374_s18 = inlined_call_operand.hbm [shape: f32[2,8,32], index: 18, kind: output, shape index: {0}]   ;;  %s3375_s19 = inlined_call_operand.hbm [shape: f32[2,2,8,8], index: 19, kind: output, shape index: {1}]  }
   0x1   :  { %3390 = sst [smem:[#allocation27_spill]] %s3356_s0 }
   0x2   :  { %3391 = sst [smem:[#allocation28_spill]] %s3357_s1 }
   0x3   :  { %3392 = sst [smem:[#allocation29_spill]] %s3358_s2 }
   0x4   :  { %3393 = sst [smem:[#allocation30_spill]] %s3359_s3 }
   0x5   :  { %3394 = sst [smem:[#allocation31_spill]] %s3360_s4 }
   0x6   :  { %3395 = sst [smem:[#allocation32_spill]] %s3361_s5 }
   0x7   :  { %3396 = sst [smem:[#allocation33_spill]] %s3362_s6 }
   0x8   :  { %3397 = sst [smem:[#allocation34_spill]] %s3363_s7 }
   0x9   :  { %3398 = sst [smem:[#allocation35_spill]] %s3364_s8 }
   0xa   :  { %3399 = sst [smem:[#allocation36_spill]] %s3365_s9 }
   0xb   :  { %3400 = sst [smem:[#allocation37_spill]] %s3367_s11 }
   0xc   :  { %3401 = sst [smem:[#allocation38_spill]] %s3368_s12 }
   0xd   :  { %3402 = sst [smem:[#allocation39_spill]] %s3369_s13 }
   0xe   :  { %3403 = sst [smem:[#allocation40_spill]] %s3371_s15 }
   0xf   :  { %3404 = sst [smem:[#allocation41_spill]] %s3372_s16 }
  0x10   :  { %3405 = sst [smem:[#allocation42_spill]] %s3373_s17 }
  0x11   :  { %3406 = sst [smem:[#allocation43_spill]] %s3374_s18 }
  0x12   :  { %3407 = sst [smem:[#allocation44_spill]] %s3375_s19 }
  0x13   :  { %25 = vsyncpa [#allocation3], 0 }
  0x14   :  { %27 = vsyncpa [#allocation3 + $0x1], 0 }
  0x15   :  { %28 = vsyncpa [#allocation6], 0 }
  0x16   :  { %30 = vsyncpa [#allocation6 + $0x1], 0 }
  0x17   :  { %31 = vsyncpa [#allocation9], 0 }
  0x18   :  { %32 = vsyncpa [#allocation12], 0 }
  0x19   :  { %33 = vsyncpa [#allocation15], 0 }
  0x1a   :  { %34 = vsyncpa [#allocation4], 0 }
  0x1b   :  { %36 = vsyncpa [#allocation4 + $0x1], 0 }
  0x1c   :  { %37 = vsyncpa [#allocation18], 0 }
  0x1d   :  { %39 = vsyncpa [#allocation18 + $0x1], 0  ;;  %s2785_s0 = smov 0   ;;  %s2787_s30 = smov 0  }
  0x1e   :  { %s2789_s20 = smov 0   ;;  %s2791_s21 = smov 0  }
  0x1f LB: > { %s2666_s1 = smov [#allocation7]   ;;  %s2806_s2 = sadd.s32 4294967295, %s2664_s21   ;;  %s2664_s21 = sphi %s2791_s21, %s3456_s21   ;;  %s2660_s20 = sphi %s2789_s20, %s3455_s20   ;;  %s2656_s30 = sphi %s2787_s30, %s3454_s30   ;;  %s2652_s0 = sphi %s2785_s0, %s3453_s0  }
  0x20   : > { %s508_s22 = sshll.u32 %s2666_s1, 4  ;;  %p1930_p0 = scmp.ge.s32.totalorder %s2664_s21, 1  ;;  %s2811_s22 = int_to_ptr.vmem [resolvable:$true] %s508_s22 }
  0x21   : > { %p3384_p1 = scmp.eq.s32.totalorder %s2806_s2, 0  ;;  %p490_p2 = scmp.lt.s32.totalorder %s2664_s21, 3 }
  0x22   : > { %s2667_s24 = smov [#allocation8]   ;;  %s2668_s26 = smov [#allocation11]  }
  0x23   : > { %p2813_p3 = pnand %p1930_p0, %p490_p2  ;;  %s521_s25 = sshll.u32 %s2667_s24, 4  ;;  %s2826_s25 = int_to_ptr.vmem [resolvable:$true] %s521_s25 }
  0x24   : > { %s2828_s27 = sshll.u32 %s2668_s26, 4  ;;  %s3410_s4 = sld [smem:[#allocation31_spill]]  ;;  %s551_s27 = int_to_ptr.vmem [resolvable:$true] %s2828_s27 }
  0x25   : > { %s3408_s23 = scalar_select %p2813_p3, 1, 0 }
  0x26   : > { %p2190_p5 = pneg %p2813_p3 }
  0x28   : > { %p2822_p6 = pnand %p2190_p5, %p3384_p1 }
  0x2a   : > { %s2318_s1 = scalar_lea.hbm %s3410_s4, 512  ;;  %p2838_p8 = pneg %p2822_p6 }
  0x2b   : > { %p2319_p7 = scmp.ne.s32.totalorder %s3410_s4, %s2318_s1  ;;  %p2325_p11 = scmp.lt.u32.totalorder %s2318_s1, %s3410_s4 }
  0x2d   : > { %p2321_p9 = pnand %p2838_p8, %p2319_p7 }
  0x2f   : > { %p2322_p10 = pneg %p2321_p9 }
  0x31   : > { %p2327_p12 = pnand %p2325_p11, %p2322_p10 }
  0x33   : > { %2330 = shalt.err (!%p2327_p12)
}
  0x34   : > { %s2331_s17 = scalar_lea.vmem %s2811_s22, 512  ;;  %p2339_p5 = scmp.lt.s32.totalorder %s2811_s22, %s2811_s22 }
  0x35   : > { %p2332_p13 = scmp.ne.s32.totalorder %s2811_s22, %s2331_s17  ;;  %p2340_p4 = scmp.lt.s32.totalorder %s2331_s17, %s2331_s17 }
  0x37   : > { %p2334_p0 = pnand %p2332_p13, %p2838_p8  ;;  %p2341_p7 = por %p2340_p4, %p2339_p5 }
  0x39   : > { %p2335_p2 = pneg %p2334_p0 }
  0x3b   : > { %p2342_p9 = pnand %p2341_p7, %p2335_p2 }
  0x3d   : > { %2345 = shalt.err (!%p2342_p9)
}
  0x3e   : > { %s3382_s18 = smov 64   ;;  %s2670_s16 = smov 4  }
  0x3f   : > { %2193 = dma.hbm_to_vmem [thread:$0]  (!%p2822_p6), %s3410_s4, 512, %s2811_s22, [#allocation6], %s3382_s18, %s3382_s18, %s2670_s16  }
  0x40   : > { %s3412_s5 = sld [smem:[#allocation32_spill]] }
  0x46   : > { %s2346_s17 = scalar_lea.hbm %s3412_s5, 32 }
  0x47   : > { %p2347_p4 = scmp.ne.s32.totalorder %s3412_s5, %s2346_s17  ;;  %p2353_p12 = scmp.lt.u32.totalorder %s2346_s17, %s3412_s5 }
  0x49   : > { %p2349_p10 = pnand %p2347_p4, %p2838_p8 }
  0x4b   : > { %p2350_p11 = pneg %p2349_p10 }
  0x4d   : > { %p2355_p13 = pnand %p2353_p12, %p2350_p11 }
  0x4f   : > { %2358 = shalt.err (!%p2355_p13)
}
  0x50   : > { %s2359_s22 = scalar_lea.vmem %s2826_s25, 32  ;;  %p2367_p7 = scmp.lt.s32.totalorder %s2826_s25, %s2826_s25 }
  0x51   : > { %p2360_p0 = scmp.ne.s32.totalorder %s2826_s25, %s2359_s22  ;;  %p2368_p9 = scmp.lt.s32.totalorder %s2359_s22, %s2359_s22 }
  0x53   : > { %p2362_p2 = pnand %p2360_p0, %p2838_p8  ;;  %p2369_p4 = por %p2368_p9, %p2367_p7 }
  0x55   : > { %p2363_p5 = pneg %p2362_p2 }
  0x57   : > { %p2370_p10 = pnand %p2369_p4, %p2363_p5 }
  0x59   : > { %2373 = shalt.err (!%p2370_p10)
}
  0x5a   : > { %s3386_s15 = smov 16   ;;  %s3387_s11 = smov 1  }
  0x5b   : > { %2196 = dma.hbm_to_vmem [thread:$0]  (!%p2822_p6), %s3412_s5, 32, %s2826_s25, [#allocation9], %s3386_s15, %s3386_s15, %s3387_s11  }
  0x5c   : > { %s3413_s8 = sld [smem:[#allocation35_spill]] }
  0x62   : > { %s2374_s1 = scalar_lea.hbm %s3413_s8, 512 }
  0x63   : > { %p2375_p11 = scmp.ne.s32.totalorder %s3413_s8, %s2374_s1  ;;  %p2381_p0 = scmp.lt.u32.totalorder %s2374_s1, %s3413_s8 }
  0x65   : > { %p2377_p12 = pnand %p2375_p11, %p2838_p8 }
  0x67   : > { %p2378_p13 = pneg %p2377_p12 }
  0x69   : > { %p2383_p2 = pnand %p2381_p0, %p2378_p13 }
  0x6b   : > { %2386 = shalt.err (!%p2383_p2)
}
  0x6c   : > { %s2387_s13 = scalar_lea.vmem %s551_s27, 512  ;;  %p2395_p4 = scmp.lt.s32.totalorder %s551_s27, %s551_s27 }
  0x6d   : > { %p2388_p5 = scmp.ne.s32.totalorder %s551_s27, %s2387_s13  ;;  %p2396_p10 = scmp.lt.s32.totalorder %s2387_s13, %s2387_s13 }
  0x6f   : > { %p2390_p7 = pnand %p2388_p5, %p2838_p8  ;;  %p2397_p1 = por %p2396_p10, %p2395_p4 }
  0x71   : > { %p2391_p9 = pneg %p2390_p7 }
  0x73   : > { %p2398_p3 = pnand %p2397_p1, %p2391_p9 }
  0x75   : > { %2401 = shalt.err (!%p2398_p3)
}
  0x76   : > { %s3414_s25 = smov 64   ;;  %s2673_s28 = smov [#allocation10]  }
  0x77   : > { %2202 = dma.hbm_to_vmem [thread:$0]  (!%p2822_p6), %s3413_s8, 512, %s551_s27, [#allocation12], %s3414_s25, %s3414_s25, %s2670_s16  }
  0x78   : > { %s537_s29 = sshll.u32 %s2673_s28, 4  ;;  %s2674_s1 = smov [#allocation13]   ;;  %s538_s29 = int_to_ptr.vmem [resolvable:$true] %s537_s29 }
  0x79   : > { %s564_s26 = sshll.u32 %s2674_s1, 4  ;;  %s3415_s7 = sld [smem:[#allocation34_spill]]  ;;  %s565_s26 = int_to_ptr.vmem [resolvable:$true] %s564_s26 }
  0x7f   : > { %s2402_s13 = scalar_lea.hbm %s3415_s7, 32 }
  0x80   : > { %p2403_p1 = scmp.ne.s32.totalorder %s3415_s7, %s2402_s13  ;;  %p2409_p12 = scmp.lt.u32.totalorder %s2402_s13, %s3415_s7 }
  0x82   : > { %p2405_p3 = pnand %p2403_p1, %p2838_p8 }
  0x84   : > { %p2406_p11 = pneg %p2405_p3 }
  0x86   : > { %p2411_p13 = pnand %p2409_p12, %p2406_p11 }
  0x88   : > { %2414 = shalt.err (!%p2411_p13)
}
  0x89   : > { %s2415_s27 = scalar_lea.vmem %s538_s29, 32  ;;  %p2423_p7 = scmp.lt.s32.totalorder %s538_s29, %s538_s29 }
  0x8a   : > { %p2416_p0 = scmp.ne.s32.totalorder %s538_s29, %s2415_s27  ;;  %p2424_p9 = scmp.lt.s32.totalorder %s2415_s27, %s2415_s27 }
  0x8c   : > { %p2418_p2 = pnand %p2416_p0, %p2838_p8  ;;  %p2425_p4 = por %p2424_p9, %p2423_p7 }
  0x8e   : > { %p2419_p5 = pneg %p2418_p2 }
  0x90   : > { %p2426_p10 = pnand %p2425_p4, %p2419_p5 }
  0x92   : > { %2429 = shalt.err (!%p2426_p10)
}
  0x93   : > { %s3416_s15 = smov 1   ;;  %s3417_s11 = smov 16  }
  0x94   : > { %2199 = dma.hbm_to_vmem [thread:$0]  (!%p2822_p6), %s3415_s7, 32, %s538_s29, [#allocation9], %s3417_s11, %s3417_s11, %s3416_s15  }
  0x95   : > { %s3418_s9 = sld [smem:[#allocation36_spill]] }
  0x9b   : > { %s2430_s17 = scalar_lea.hbm %s3418_s9, 16 }
  0x9c   : > { %p2431_p1 = scmp.ne.s32.totalorder %s3418_s9, %s2430_s17  ;;  %p2437_p12 = scmp.lt.u32.totalorder %s2430_s17, %s3418_s9 }
  0x9e   : > { %p2433_p3 = pnand %p2431_p1, %p2838_p8 }
  0xa0   : > { %p2434_p11 = pneg %p2433_p3 }
  0xa2   : > { %p2439_p13 = pnand %p2437_p12, %p2434_p11 }
  0xa4   : > { %2442 = shalt.err (!%p2439_p13)
}
  0xa5   : > { %s2443_s4 = scalar_lea.vmem %s565_s26, 16  ;;  %s2450_s29 = scalar_lea.vmem %s565_s26, 32 }
  0xa6   : > { %p2444_p0 = scmp.ne.s32.totalorder %s565_s26, %s2443_s4  ;;  %p2451_p7 = scmp.lt.s32.totalorder %s565_s26, %s565_s26 }
  0xa7   : > { %p2452_p9 = scmp.lt.s32.totalorder %s2450_s29, %s2443_s4 }
  0xa8   : > { %p2446_p2 = pnand %p2444_p0, %p2838_p8 }
  0xa9   : > { %p2453_p4 = por %p2452_p9, %p2451_p7 }
  0xaa   : > { %p2447_p5 = pneg %p2446_p2 }
  0xac   : > { %p2454_p10 = pnand %p2453_p4, %p2447_p5 }
  0xae   : > { %2457 = shalt.err (!%p2454_p10)
}
  0xaf   : > { %2205 = dma.hbm_to_vmem [thread:$0]  (!%p2822_p6), %s3418_s9, 16, %s565_s26, [#allocation12]  }
  0xb0   : > { %s2675_s19 = smov [#allocation14]   ;;  %s3419_s12 = sld [smem:[#allocation38_spill]] }
  0xb1   : > { %s580_s28 = sshll.u32 %s2675_s19, 4  ;;  %s581_s28 = int_to_ptr.vmem [resolvable:$true] %s580_s28 }
  0xb6   : > { %s2458_s22 = scalar_lea.hbm %s3419_s12, 256 }
  0xb7   : > { %p2459_p1 = scmp.ne.s32.totalorder %s3419_s12, %s2458_s22  ;;  %p2465_p12 = scmp.lt.u32.totalorder %s2458_s22, %s3419_s12 }
  0xb9   : > { %p2461_p3 = pnand %p2459_p1, %p2838_p8 }
  0xbb   : > { %p2462_p11 = pneg %p2461_p3 }
  0xbd   : > { %p2467_p13 = pnand %p2465_p12, %p2462_p11 }
  0xbf   : > { %2470 = shalt.err (!%p2467_p13)
}
  0xc0   : > { %s2471_s26 = scalar_lea.vmem %s581_s28, 256  ;;  %p2479_p7 = scmp.lt.s32.totalorder %s581_s28, %s581_s28 }
  0xc1   : > { %p2472_p0 = scmp.ne.s32.totalorder %s581_s28, %s2471_s26  ;;  %p2480_p9 = scmp.lt.s32.totalorder %s2471_s26, %s2471_s26 }
  0xc3   : > { %p2474_p2 = pnand %p2472_p0, %p2838_p8  ;;  %p2481_p4 = por %p2480_p9, %p2479_p7 }
  0xc5   : > { %p2475_p5 = pneg %p2474_p2 }
  0xc7   : > { %p2482_p10 = pnand %p2481_p4, %p2475_p5 }
  0xc9   : > { %2485 = shalt.err (!%p2482_p10)
}
  0xca   : > { %2208 = dma.hbm_to_vmem [thread:$0]  (!%p2822_p6), %s3419_s12, 256, %s581_s28, [#allocation15], %s3414_s25, %s3414_s25, %s2670_s16  }
  0xcb   : > { %s1929_s3 = sadd.s32 4294967294, %s2664_s21   ;;  %s2972_s24 = sadd.s32 1, %s2664_s21  }
  0xcc   : > { %s49_s11 = ssub.s32 %s2664_s21, %s2972_s24  ;;  %s52_s19 = sadd.s32 1, %s2660_s20 }
  0xcd   : > { %p50_p8 = scmp.eq.s32.totalorder %s49_s11, 0  ;;  %p59_p1 = scmp.ne.s32.totalorder %s2660_s20, %s2656_s30 }
  0xce   : > { %p60_p3 = scmp.eq.s32.totalorder %s2664_s21, 0  ;;  %p65_p11 = scmp.ne.s32.totalorder %s2656_s30, %s2652_s0 }
  0xcf   : > { %s2983_s1 = scalar_select %p50_p8, %s2660_s20, %s52_s19  }
  0xd0   : > { %p2985_p12 = por %p60_p3, %p59_p1  ;;  %p3421_p13 = scmp.eq.s32.totalorder %s2806_s2, 0 }
  0xd1   : > { %p451_p0 = scmp.eq.s32.totalorder %s2806_s2, 1  ;;  %p457_p2 = scmp.eq.s32.totalorder %s1929_s3, 1 }
  0xd2   : > { %p2991_p6 = por %p3421_p13, %p65_p11  ;;  %p2229_p5 = scmp.lt.s32.totalorder %s2664_s21, 2 }
  0xd3   : > { %s2998_s25 = sand.u32 1, %s2660_s20   ;;  %p3000_p7 = por %p451_p0, %p59_p1 }
  0xd4   : > { %s3422_s16 = scalar_select %p2991_p6, 1, 0 }
  0xd5   : > { %s3423_s28 = scalar_select %p3000_p7, 1, 0 }
  0xd6   : > { %p3004_p9 = por %p457_p2, %p65_p11  ;;  %s1938_s13 = sshll.u32 %s2998_s25, 3 }
  0xd7   : > { %s1939_s18 = sshll.u32 %s2664_s21, 7  ;;  %s3425_s26 = sld [smem:[#allocation27_spill]] }
  0xd8   : > { %s3424_s22 = scalar_select %p3004_p9, 1, 0 }
  0xd9   : > { %s613_s15 = scalar_lea.vmem [#allocation2], %s1938_s13  ;;  %p3019_p4 = pnand %p2229_p5, %p2985_p12 }
  0xda   : > { %s620_s3 = sshll.u32 %s613_s15, 4  ;;  %s610_s27 = scalar_lea.sflag [#allocation3], %s2998_s25  ;;  %s3015_s3 = int_to_ptr.vmem [resolvable:$true] %s620_s3 }
  0xdb   : > { %p2488_p8 = pneg %p3019_p4 }
  0xdd   : > { %s3013_s29 = scalar_lea.hbm %s3425_s26, %s1939_s18  ;;  %s2491_s17 = scalar_lea.hbm %s3425_s26, 256 }
  0xde   : > { %s2486_s18 = scalar_lea.hbm %s3013_s29, 128  ;;  %p2492_p11 = scmp.lt.u32.totalorder %s3013_s29, %s3425_s26 }
  0xdf   : > { %p2487_p10 = scmp.ne.s32.totalorder %s3013_s29, %s2486_s18  ;;  %p2493_p12 = scmp.lt.u32.totalorder %s2491_s17, %s2486_s18 }
  0xe0   : > { %p2495_p0 = scmp.lt.u32.totalorder %s2486_s18, %s3013_s29 }
  0xe1   : > { %p2489_p1 = pnand %p2488_p8, %p2487_p10  ;;  %p2494_p13 = por %p2493_p12, %p2492_p11 }
  0xe3   : > { %p2490_p3 = pneg %p2489_p1  ;;  %p2496_p2 = por %p2495_p0, %p2494_p13 }
  0xe5   : > { %p2497_p5 = pnand %p2496_p2, %p2490_p3 }
  0xe7   : > { %2500 = shalt.err (!%p2497_p5)
}
  0xe8   : > { %s2501_s19 = scalar_lea.vmem %s3015_s3, 128  ;;  %s2676_s13 = smov [#allocation2]  }
  0xe9   : > { %p2502_p10 = scmp.ne.s32.totalorder %s3015_s3, %s2501_s19  ;;  %s2506_s4 = sshll.u32 %s2676_s13, 4  ;;  %s2507_s4 = int_to_ptr.vmem [resolvable:$false] %s2506_s4 }
  0xea   : > { %s2508_s7 = scalar_lea.vmem %s2507_s4, 256  ;;  %p2509_p7 = scmp.lt.s32.totalorder %s3015_s3, %s2507_s4 }
  0xeb   : > { %p2504_p1 = pnand %p2502_p10, %p2488_p8  ;;  %p2510_p11 = scmp.lt.s32.totalorder %s2508_s7, %s2501_s19 }
  0xed   : > { %p2505_p9 = pneg %p2504_p1  ;;  %p2511_p12 = por %p2510_p11, %p2509_p7 }
  0xef   : > { %p2512_p13 = pnand %p2511_p12, %p2505_p9 }
  0xf1   : > { %2515 = shalt.err (!%p2512_p13)
}
  0xf2   : > { %2212 = dma.hbm_to_vmem [thread:$0]  (!%p3019_p4), %s3013_s29, 128, %s3015_s3, %s610_s27  }
  0xf3   : > { %s1941_s18 = sshll.u32 %s2664_s21, 5  ;;  %s3427_s13 = sld [smem:[#allocation28_spill]] }
  0xf4   : > { %s3428_s4 = sshll.u32 %s2998_s25, 1  ;;  %s3429_s8 = sand.u32 1, %s2664_s21  }
  0xf5   : > { %s631_s19 = scalar_lea.vmem [#allocation5], %s3428_s4  ;;  %s628_s9 = scalar_lea.sflag [#allocation6], %s3429_s8 }
  0xf6   : > { %s638_s7 = sshll.u32 %s631_s19, 4  ;;  %s639_s7 = int_to_ptr.vmem [resolvable:$true] %s638_s7 }
  0xf9   : > { %s3055_s5 = scalar_lea.hbm %s3427_s13, %s1941_s18  ;;  %s2521_s27 = scalar_lea.hbm %s3427_s13, 64 }
  0xfa   : > { %s2516_s12 = scalar_lea.hbm %s3055_s5, 32  ;;  %p2522_p0 = scmp.lt.u32.totalorder %s3055_s5, %s3427_s13 }
  0xfb   : > { %p2517_p7 = scmp.ne.s32.totalorder %s3055_s5, %s2516_s12  ;;  %p2523_p2 = scmp.lt.u32.totalorder %s2521_s27, %s2516_s12 }
  0xfc   : > { %p2525_p10 = scmp.lt.u32.totalorder %s2516_s12, %s3055_s5 }
  0xfd   : > { %p2519_p9 = pnand %p2517_p7, %p2488_p8  ;;  %p2524_p5 = por %p2523_p2, %p2522_p0 }
  0xff   : > { %p2520_p3 = pneg %p2519_p9  ;;  %p2526_p1 = por %p2525_p10, %p2524_p5 }
 0x101   : > { %p2527_p11 = pnand %p2526_p1, %p2520_p3 }
 0x103   : > { %2530 = shalt.err (!%p2527_p11)
}
 0x104   : > { %s2531_s8 = scalar_lea.vmem %s639_s7, 32  ;;  %s2677_s17 = smov [#allocation5]  }
 0x105   : > { %p2532_p12 = scmp.ne.s32.totalorder %s639_s7, %s2531_s8  ;;  %s2536_s15 = sshll.u32 %s2677_s17, 4  ;;  %s2537_s15 = int_to_ptr.vmem [resolvable:$false] %s2536_s15 }
 0x106   : > { %s2538_s4 = scalar_lea.vmem %s2537_s15, 64  ;;  %p2539_p9 = scmp.lt.s32.totalorder %s639_s7, %s2537_s15 }
 0x107   : > { %p2534_p13 = pnand %p2532_p12, %p2488_p8  ;;  %p2540_p6 = scmp.lt.s32.totalorder %s2538_s4, %s2531_s8 }
 0x109   : > { %p2535_p7 = pneg %p2534_p13  ;;  %p2541_p0 = por %p2540_p6, %p2539_p9 }
 0x10b   : > { %p2542_p2 = pnand %p2541_p0, %p2535_p7 }
 0x10d   : > { %2545 = shalt.err (!%p2542_p2)
}
 0x10e   : > { %2215 = dma.hbm_to_vmem [thread:$0]  (!%p3019_p4), %s3055_s5, 32, %s639_s7, %s628_s9  }
 0x10f   : > { %p3430_p3 = scmp.ne.s32.totalorder %s3408_s23, 0 }
 0x110   : > { %s3083_s12 = sand.u32 (!%p3430_p3), 1, %s2656_s30   ;;  %p3431_p6 = scmp.ne.s32.totalorder (!%p3430_p3), %s3422_s16, 0 }
 0x111   : > { %647 = sbr.rel (%p3430_p3) target bundleno = 2584 (0xa18), region = 92  ;;  %s1943_s19 = sshll.u32 (!%p3430_p3), %s3083_s12, 3 }
 0x112   : > { %s650_s29 = scalar_lea.sflag (!%p3430_p3), [#allocation3], %s3083_s12  ;;  %s3089_s3 = scalar_lea.vmem (!%p3430_p3), [#allocation2], %s1943_s19 }
 0x118   : > { %2619 = dma.done.wait (%p3431_p6), %s650_s29, 128  }
 0x119   : > { %2621 = vsyncadd (%p3431_p6), %s650_s29, 4294967168  ;;  %s658_s5 = sand.u32 1, %s2806_s2   ;;  %s1944_s9 = sshll.u32 %s3083_s12, 1 }
 0x11a   : > { %s659_s23 = scalar_lea.sflag [#allocation6], %s658_s5  ;;  %s3097_s11 = scalar_lea.vmem [#allocation5], %s1944_s9 }
 0x11b   : > { %2623 = dma.done.wait (%p3431_p6), %s659_s23, 32  }
 0x11c   : > { %2625 = vsyncadd (%p3431_p6), %s659_s23, 4294967264  ;;  %p3432_p4 = scmp.eq.s32.totalorder %s2806_s2, 0 }
 0x11e   : > { %2627 = dma.done.wait (%p3432_p4), [#allocation6], 512   ;;  %p3433_p8 = pmov %p3432_p4 }
 0x11f   : > { %p3434_p5 = pmov %p3432_p4 }
 0x120   : > { %2629 = vsyncadd (%p3433_p8), [#allocation6], 4294966784 }
 0x121   : > { %2631 = dma.done.wait (%p3434_p5), [#allocation9], 64   ;;  %p3435_p10 = pmov %p3432_p4 }
 0x122   : > { %p3436_p1 = pmov %p3432_p4 }
 0x123   : > { %2633 = vsyncadd (%p3435_p10), [#allocation9], 4294967232 }
 0x124   : > { %2635 = dma.done.wait (%p3436_p1), [#allocation12], 528   ;;  %p3437_p11 = pmov %p3436_p1 }
 0x125   : > { %p3438_p12 = pmov %p3436_p1 }
 0x126   : > { %2637 = vsyncadd (%p3437_p11), [#allocation12], 4294966768 }
 0x127   : > { %2639 = dma.done.wait (%p3438_p12), [#allocation15], 256   ;;  %p3439_p13 = pmov %p3436_p1 }
 0x128   : > { %v2678_v0 = vmov 0.0   ;;  %vm2679_vm0 = vmmov 0   ;;  %s3440_s27 = sld [smem:[#allocation29_spill]]  ;;  %v3140_v5 = vld [vmem:[%s3089_s3] sm:$0xff]  ;;  %vm790_vm1 = vcmask 261120   ;;  %v2288_v7 = vld [vmem:[#allocation7] sm:$0xff]  }
 0x129   : > { %2641 = vsyncadd (%p3439_p13), [#allocation15], 4294967040  ;;  %2050 = vmatprep.subr.bf16.mxu0 %v2678_v0  ;;  %2058 = vmatprep.subr.bf16.mxu1 %v2678_v0  ;;  %v755_v6 = vpack.c.bf16 %v3140_v5, %v3140_v5  ;;  %v2289_v8 = vld [vmem:[#allocation7 + $0x10] sm:$0xff]   ;;  %v2290_v9 = vld [vmem:[#allocation7 + $0x8] sm:$0xff]   ;;  %s3441_s6 = sld [smem:[#allocation33_spill]]  ;;  %s3442_s17 = sld [smem:[#allocation30_spill]] }
 0x12a   : > { %2054 = vmatprep.mubr.msk.bf16.mxu0 %vm2679_vm0, %v2678_v0  ;;  %2062 = vmatprep.mubr.msk.bf16.mxu1 %vm2679_vm0, %v2678_v0  ;;  %v2291_v10 = vld [vmem:[#allocation7 + $0x18] sm:$0xff]   ;;  %v1961_v23 = vld [vmem:[#allocation8] ss:$0 sm:$0xff]  ;;  %v1962_v24 = vld [vmem:[#allocation8 + $0x1] ss:$0 sm:$0xff]  ;;  %vm1277_vm2 = vcmask 1043456  }
 0x12b   : > { %v1969_v47 = vld [vmem:[#allocation10] ss:$0 sm:$0xff]  ;;  %v1970_v48 = vld [vmem:[#allocation10 + $0x1] ss:$0 sm:$0xff]  ;;  %v1236_v63 = vld [vmem:[%s3097_s11] sm:$0x3] }
 0x12c   : > { %vm1237_vm3 = vnez %v1236_v63  ;;  %vm1245_vm5 = vcmask 64512   ;;  %s1952_s11 = sshll.u32 %s3083_s12, 4  ;;  %s3443_s8 = sld [smem:[#allocation37_spill]]  ;;  %vm1637_vm6 = vcmask 523264  }
 0x12d   : > { %s3208_s29 = scalar_lea.vmem [#allocation17], %s1952_s11  ;;  %s3444_s23 = sld [smem:[#allocation39_spill]] }
 0x12e   : > { %v2284_v1 = vld [vmem:[%s3440_s27] sm:$0xff]   ;;  %v2285_v2 = vld [vmem:[%s3440_s27 + $0x10] sm:$0xff]   ;;  %v2286_v3 = vld [vmem:[%s3440_s27 + $0x8] sm:$0xff]   ;;  %s3445_s25 = sld [smem:[#allocation40_spill]]  ;;  %s2009_s18 = sshll.u32 %s2806_s2, 8 }
 0x12f   : > { %2051 = vmatpush3.bf16.msra.mxu0 %v2284_v1  ;;  %2059 = vmatpush3.bf16.msra.mxu1 %v2285_v2  ;;  %v2287_v4 = vld [vmem:[%s3440_s27 + $0x18] sm:$0xff]   ;;  %v2292_v11 = vld [vmem:[%s3441_s6] sm:$0xff]   ;;  %v2293_v12 = vld [vmem:[%s3441_s6 + $0x10] sm:$0xff]   ;;  %v2680_v1 = vmov 0   ;;  %s3446_s11 = sld [smem:[#allocation44_spill]]  ;;  %s1718_s5 = scalar_lea.sflag [#allocation18], %s3083_s12 }
 0x130   : > { %2052 = vmatprep.subr.bf16.mxu0 %v2678_v0  ;;  %2060 = vmatprep.subr.bf16.mxu1 %v2678_v0  ;;  %v2294_v13 = vld [vmem:[%s3441_s6 + $0x8] sm:$0xff]   ;;  %v2295_v14 = vld [vmem:[%s3441_s6 + $0x18] sm:$0xff]   ;;  %v1953_v25 = vld [vmem:[%s3442_s17] ss:$0 sm:$0xff]  ;;  %v1238_v2 = vsel %vm1237_vm3, 16843009, %v2680_v1 }
 0x131   : > { %v1954_v27 = vld [vmem:[%s3442_s17 + $0x1] ss:$0 sm:$0xff]  ;;  %p3447_p9 = scmp.ne.s32.totalorder %s3423_s28, 0 }
 0x133   : > { %2053 = vmatpush3.bf16.msra.mxu0 %v2286_v3  ;;  %2061 = vmatpush3.bf16.msra.mxu1 %v2287_v4  ;;  %v1239_v3 = vunpack.c.0.s8 %v1238_v2 }
 0x134   : > { %2066 = vmatprep.subr.bf16.mxu0 %v2678_v0  ;;  %2074 = vmatprep.subr.bf16.mxu1 %v2678_v0 }
 0x135   : > { %vm1240_vm4 = vcmp.ne.s32.totalorder %v1239_v3, 0  ;;  %s3271_s3 = scalar_lea.hbm %s3446_s11, %s2009_s18 }
 0x136   : > { %2055 = vmatmul.mubr.msk.bf16.vlgmr.msra.gmra.mrb[0].mxu0 %vm790_vm1, %v755_v6  ;;  %2063 = vmatmul.mubr.msk.bf16.vlgmr.msra.gmra.mrb[0].mxu1 %vm790_vm1, %v755_v6 }
 0x137   : > { %2067 = vmatpush3.bf16.msra.mxu0 %v2288_v7  ;;  %2075 = vmatpush3.bf16.msra.mxu1 %v2289_v8 }
 0x138   : > { %2068 = vmatprep.subr.bf16.mxu0 %v2678_v0  ;;  %2076 = vmatprep.subr.bf16.mxu1 %v2678_v0 }
 0x139   : > { %2070 = vmatprep.mubr.msk.bf16.mxu0 %vm2679_vm0, %v2678_v0  ;;  %2078 = vmatprep.mubr.msk.bf16.mxu1 %vm2679_vm0, %v2678_v0 }
 0x13b   : > { %2069 = vmatpush3.bf16.msra.mxu0 %v2290_v9  ;;  %2077 = vmatpush3.bf16.msra.mxu1 %v2291_v10 }
 0x13c   : > { %2082 = vmatprep.subr.bf16.mxu0 %v2678_v0  ;;  %2090 = vmatprep.subr.bf16.mxu1 %v2678_v0 }
 0x13e   : > { %2071 = vmatmul.mubr.msk.bf16.vlgmr.msra.gmra.mrb[4].mxu0 %vm790_vm1, %v755_v6  ;;  %2079 = vmatmul.mubr.msk.bf16.vlgmr.msra.gmra.mrb[4].mxu1 %vm790_vm1, %v755_v6 }
 0x13f   : > { %2086 = vmatprep.mubr.msk.bf16.mxu0 %vm2679_vm0, %v2678_v0  ;;  %2094 = vmatprep.mubr.msk.bf16.mxu1 %vm2679_vm0, %v2678_v0 }
 0x140   : > { %2083 = vmatpush3.bf16.msra.mxu0 %v2292_v11  ;;  %2091 = vmatpush3.bf16.msra.mxu1 %v2293_v12 }
 0x141   : > { %2084 = vmatprep.subr.bf16.mxu0 %v2678_v0  ;;  %2092 = vmatprep.subr.bf16.mxu1 %v2678_v0 }
 0x144   : > { %2085 = vmatpush3.bf16.msra.mxu0 %v2294_v13  ;;  %2093 = vmatpush3.bf16.msra.mxu1 %v2295_v14 }
 0x145   : > { %2098 = vmatprep.subr.bf16.mxu0 %v2678_v0  ;;  %2104 = vmatprep.subr.bf16.mxu1 %v2678_v0 }
 0x147   : > { %2087 = vmatmul.mubr.msk.bf16.vlgmr.msra.gmra.mrb[8].mxu0 %vm790_vm1, %v755_v6  ;;  %2095 = vmatmul.mubr.msk.bf16.vlgmr.msra.gmra.mrb[8].mxu1 %vm790_vm1, %v755_v6 }
 0x148   : > { %2100 = vmatprep.mubr.msk.bf16.mxu0 %vm2679_vm0, %v2678_v0  ;;  %2106 = vmatprep.mubr.msk.bf16.mxu1 %vm2679_vm0, %v2678_v0 }
 0x209   : > { %v828_v15 = vpop.f32.mrb[0].mxu0  ;;  %v880_v17 = vpop.f32.mrb[0].mxu1 }
 0x20a   : > { %v2056_v16 = vpop.f32.mrb[1].mxu0  ;;  %v2064_v19 = vpop.f32.mrb[1].mxu1  ;;  %v829_v34 = vadd.f32 %v1953_v25, %v828_v15  ;;  %v881_v38 = vadd.f32 %v1954_v27, %v880_v17 }
 0x20b   : > { %v831_v18 = vpop.f32.mrb[2].mxu0  ;;  %v883_v21 = vpop.f32.mrb[2].mxu1 }
 0x20c   : > { %v2057_v20 = vpop.f32.mrb[3].mxu0  ;;  %v2065_v22 = vpop.f32.mrb[3].mxu1  ;;  %v1138_v43 = vmul.f32 0.17677669, %v829_v34  ;;  %v1139_v44 = vmul.f32 0.17677669, %v881_v38 }
 0x20d   : > { %v2299_v38 = vld [vmem:[#allocation11 + $0x18] sm:$0xff]  }
 0x20e   : > { %v1140_v45 = vpack.c.bf16 %v1138_v43, %v1138_v43  ;;  %v1141_v46 = vpack.c.bf16 %v1139_v44, %v1139_v44 }
 0x211   : > { %v954_v26 = vpop.f32.mrb[4].mxu0  ;;  %v1006_v29 = vpop.f32.mrb[4].mxu1 }
 0x212   : > { %v955_v28 = vadd.f32 %v1961_v23, %v954_v26  ;;  %v2072_v30 = vpop.f32.mrb[5].mxu0  ;;  %v1007_v31 = vadd.f32 %v1962_v24, %v1006_v29  ;;  %v2080_v33 = vpop.f32.mrb[5].mxu1 }
 0x213   : > { %v957_v32 = vpop.f32.mrb[6].mxu0  ;;  %v1009_v37 = vpop.f32.mrb[6].mxu1 }
 0x214   : > { %v1142_v35 = vpack.c.bf16 %v955_v28, %v955_v28  ;;  %v2073_v36 = vpop.f32.mrb[7].mxu0  ;;  %v1143_v39 = vpack.c.bf16 %v1007_v31, %v1007_v31  ;;  %v2081_v40 = vpop.f32.mrb[7].mxu1  ;;  %v2296_v31 = vld [vmem:[#allocation11] sm:$0xff]   ;;  %v2298_v37 = vld [vmem:[#allocation11 + $0x10] sm:$0xff]  }
 0x215   : > { %v2297_v36 = vld [vmem:[#allocation11 + $0x8] sm:$0xff]  }
 0x216   : > { %v1148_v41 = vsel %vm790_vm1, %v1142_v35, 0  ;;  %v1194_v42 = vsel %vm790_vm1, %v1143_v39, 0 }
 0x217   : > { %2099 = vmatpush3.bf16.xpose.msra.mxu0 %v1148_v41  ;;  %2105 = vmatpush3.bf16.xpose.msra.mxu1 %v1194_v42 }
 0x218   : > { %2110 = vmatprep.subr.bf16.mxu0 %v2678_v0  ;;  %2116 = vmatprep.subr.bf16.mxu1 %v2678_v0 }
 0x21a   : > { %v1080_v49 = vpop.f32.mrb[8].mxu0  ;;  %v1132_v50 = vpop.f32.mrb[8].mxu1 }
 0x21b   : > { %v1081_v51 = vadd.f32 %v1969_v47, %v1080_v49  ;;  %v2088_v52 = vpop.f32.mrb[9].mxu0  ;;  %v1133_v53 = vadd.f32 %v1970_v48, %v1132_v50  ;;  %v2096_v54 = vpop.f32.mrb[9].mxu1 }
 0x21c   : > { %v1083_v55 = vpop.f32.mrb[10].mxu0  ;;  %v1135_v56 = vpop.f32.mrb[10].mxu1 }
 0x21d   : > { %v1272_v57 = vpack.c.bf16 %v1081_v51, %v1081_v51  ;;  %v2089_v58 = vpop.f32.mrb[11].mxu0  ;;  %v1273_v59 = vpack.c.bf16 %v1133_v53, %v1133_v53  ;;  %v2097_v60 = vpop.f32.mrb[11].mxu1  ;;  %v1987_v56 = vld [vmem:[#allocation13] ss:$0 sm:$0xff] }
 0x21e   : > { %2101 = vmatmul.mubr.msk.bf16.vlgmr.msra.gmra.mrb[12].mxu0 %vm790_vm1, %v1140_v45  ;;  %2107 = vmatmul.mubr.msk.bf16.vlgmr.msra.gmra.mrb[12].mxu1 %vm790_vm1, %v1141_v46 }
 0x21f   : > { %2112 = vmatprep.mubr.msk.bf16.mxu0 %vm2679_vm0, %v2678_v0  ;;  %2118 = vmatprep.mubr.msk.bf16.mxu1 %vm2679_vm0, %v2678_v0  ;;  %v1279_v61 = vsel %vm1277_vm2, %v1272_v57, 0  ;;  %v1325_v62 = vsel %vm1277_vm2, %v1273_v59, 0 }
 0x220   : > { %2111 = vmatpush3.bf16.msra.mxu0 %v1279_v61  ;;  %2117 = vmatpush3.bf16.msra.mxu1 %v1325_v62 }
 0x221   : > { %2122 = vmatprep.subr.bf16.mxu0 %v2678_v0  ;;  %2130 = vmatprep.subr.bf16.mxu1 %v2678_v0 }
 0x2f1   : > { %v1184_v4 = vpop.f32.mrb[12].mxu0  ;;  %v1230_v7 = vpop.f32.mrb[12].mxu1 }
 0x2f2   : > { %v1243_v6 = vsel %vm1240_vm4, -1e+09, %v1184_v4  ;;  %v2102_v8 = vpop.f32.mrb[13].mxu0  ;;  %v2108_v9 = vpop.f32.mrb[13].mxu1  ;;  %v1244_v12 = vsel %vm1240_vm4, -1e+09, %v1230_v7 }
 0x2f3   : > { %v1187_v10 = vpop.f32.mrb[14].mxu0  ;;  %v1246_v11 = vsel %vm1245_vm5, %v1243_v6, -inf  ;;  %v1233_v13 = vpop.f32.mrb[14].mxu1  ;;  %v1249_v16 = vsel %vm1245_vm5, %v1244_v12, -inf  ;;  %v2300_v7 = vld [vmem:[#allocation14] sm:$0xff]   ;;  %v2301_v8 = vld [vmem:[#allocation14 + $0x8] sm:$0xff]  }
 0x2f4   : > { %1247 = vmax.xlane.f32.xlu0 %v1246_v11  ;;  %v2103_v14 = vpop.f32.mrb[15].mxu0  ;;  %v2109_v15 = vpop.f32.mrb[15].mxu1  ;;  %v2303_v9 = vld [vmem:[%s3370_s14 + $0x8] sm:$0xff]  }
 0x2f5   : > { %v1988_v14 = vld [vmem:[%s3366_s10] ss:$0 sm:$0xff] }
 0x2f8   : > { %1250 = vmax.xlane.f32.xlu0 %v1249_v16  ;;  %v1989_v16 = vld [vmem:[%s3443_s8] ss:$0 sm:$0xff]  ;;  %s1744_s8 = sshll.u32 %s3208_s29, 4  ;;  %s3273_s8 = int_to_ptr.vmem [resolvable:$true] %s1744_s8 }
 0x2f9   : > { %s2546_s9 = scalar_lea.vmem %s3273_s8, 256 }
 0x2fa   : > { %p2547_p7 = scmp.ne.s32.totalorder %s3273_s8, %s2546_s9 }
 0x2fc   : > { %p2548_p0 = pnand %p2547_p7, %p3447_p9 }
 0x2fe   : > { %p2549_p2 = pneg %p2548_p0 }
 0x381   : > { %v1248_v17 = vpop.xlane.xlu0 %1247 }
 0x382   : > { %v1252_v18 = vsub.f32 %v1243_v6, %v1248_v17 }
 0x384   : > { %v1254_v19 = vmul.f32 1.442695, %v1252_v18 }
 0x385   : > { %v1251_v20 = vpop.xlane.xlu0 %1250 }
 0x386   : > { %2306 = vpow2.f32 %v1254_v19  ;;  %v1253_v21 = vsub.f32 %v1244_v12, %v1251_v20  ;;  %v2304_v20 = vld [vmem:[%s3370_s14 + $0x10] sm:$0xff]  }
 0x388   : > { %v1256_v22 = vmul.f32 1.442695, %v1253_v21  ;;  %v2305_v21 = vld [vmem:[%s3370_s14 + $0x18] sm:$0xff]  }
 0x38a   : > { %2308 = vpow2.f32 %v1256_v22  ;;  %v1990_v22 = vld [vmem:[%s3444_s23] ss:$0 sm:$0xff]  ;;  %s2681_s23 = smov [#allocation17]  }
 0x38b   : > { %s2550_s16 = sshll.u32 %s2681_s23, 4  ;;  %s2551_s16 = int_to_ptr.vmem [resolvable:$false] %s2550_s16 }
 0x38c   : > { %p2553_p3 = scmp.lt.s32.totalorder %s3273_s8, %s2551_s16 }
 0x390   : > { %v2307_v23 = vpop.eup %2306 }
 0x391   : > { %v1258_v24 = vsel %vm1245_vm5, %v2307_v23, 0.0 }
 0x392   : > { %1259 = vadd.xlane.f32.xlu1 %v1258_v24 }
 0x394   : > { %v2309_v25 = vpop.eup %2308 }
 0x395   : > { %v1261_v26 = vsel %vm1245_vm5, %v2309_v25, 0.0 }
 0x396   : > { %1262 = vadd.xlane.f32.xlu1 %v1261_v26 }
 0x41f   : > { %v1260_v27 = vpop.xlane.xlu1 %1259 }
 0x420   : > { %2310 = vrcp.f32 %v1260_v27 }
 0x423   : > { %v1263_v28 = vpop.xlane.xlu1 %1262 }
 0x424   : > { %2312 = vrcp.f32 %v1263_v28 }
 0x42a   : > { %v2311_v29 = vpop.eup %2310 }
 0x42b   : > { %v1266_v30 = vmul.f32 %v2311_v29, %v2307_v23 }
 0x42d   : > { %v1270_v32 = vpack.c.bf16 %v1266_v30, %v1266_v30  ;;  %1268 = vst.msk [vmem:[%s3208_s29] sm:$0xff] %vm1245_vm5, %v1266_v30 }
 0x42e   : > { %v2313_v33 = vpop.eup %2312 }
 0x42f   : > { %v1267_v34 = vmul.f32 %v2313_v33, %v2309_v25  ;;  %2113 = vmatmul.mubr.msk.bf16.vlgmr.msra.gmra.mrb[16].mxu0 %vm1245_vm5, %v1270_v32 }
 0x430   : > { %2123 = vmatpush3.bf16.msra.mxu0 %v2296_v31  ;;  %2126 = vmatprep.mubr.msk.bf16.mxu0 %vm2679_vm0, %v2678_v0 }
 0x431   : > { %v1271_v35 = vpack.c.bf16 %v1267_v34, %v1267_v34  ;;  %2124 = vmatprep.subr.bf16.mxu0 %v2678_v0  ;;  %1269 = vst.msk [vmem:[%s3208_s29 + $0x8] sm:$0xff] %vm1245_vm5, %v1267_v34  ;;  %s2552_s29 = scalar_lea.vmem %s2551_s16, 512 }
 0x432   : > { %p2554_p6 = scmp.lt.s32.totalorder %s2552_s29, %s2546_s9 }
 0x433   : > { %2119 = vmatmul.mubr.msk.bf16.vlgmr.msra.gmra.mrb[16].mxu1 %vm1245_vm5, %v1271_v35 }
 0x434   : > { %2134 = vmatprep.mubr.msk.bf16.mxu1 %vm2679_vm0, %v2678_v0  ;;  %2125 = vmatpush3.bf16.msra.mxu0 %v2297_v36  ;;  %p2555_p4 = por %p2554_p6, %p2553_p3 }
 0x435   : > { %2131 = vmatpush3.bf16.msra.mxu1 %v2298_v37  ;;  %2138 = vmatprep.subr.bf16.mxu0 %v2678_v0 }
 0x436   : > { %2132 = vmatprep.subr.bf16.mxu1 %v2678_v0  ;;  %p2556_p8 = pnand %p2555_p4, %p2549_p2 }
 0x439   : > { %2133 = vmatpush3.bf16.msra.mxu1 %v2299_v38 }
 0x43a   : > { %2146 = vmatprep.subr.bf16.mxu1 %v2678_v0 }
 0x502   : > { %v1315_v39 = vpop.f32.mrb[16].mxu0 }
 0x503   : > { %v1367_v40 = vpack.c.bf16 %v1315_v39, %v1315_v39  ;;  %v2114_v41 = vpop.f32.mrb[17].mxu0 }
 0x504   : > { %v1318_v42 = vpop.f32.mrb[18].mxu0 }
 0x505   : > { %v2115_v43 = vpop.f32.mrb[19].mxu0  ;;  %2127 = vmatmul.mubr.msk.bf16.vlgmr.msra.gmra.mrb[20].mxu0 %vm790_vm1, %v1367_v40 }
 0x506   : > { %v1361_v44 = vpop.f32.mrb[16].mxu1  ;;  %2142 = vmatprep.mubr.msk.bf16.mxu0 %vm2679_vm0, %v2678_v0  ;;  %2139 = vmatpush3.bf16.msra.mxu0 %v2300_v7 }
 0x507   : > { %v1368_v45 = vpack.c.bf16 %v1361_v44, %v1361_v44  ;;  %v2120_v46 = vpop.f32.mrb[17].mxu1  ;;  %2140 = vmatprep.subr.bf16.mxu0 %v2678_v0 }
 0x508   : > { %v1364_v47 = vpop.f32.mrb[18].mxu1 }
 0x509   : > { %v2121_v48 = vpop.f32.mrb[19].mxu1  ;;  %2135 = vmatmul.mubr.msk.bf16.vlgmr.msra.gmra.mrb[20].mxu1 %vm790_vm1, %v1368_v45 }
 0x50a   : > { %2154 = vmatprep.mubr.msk.bf16.mxu1 %vm2679_vm0, %v2678_v0  ;;  %2141 = vmatpush3.bf16.msra.mxu0 %v2301_v8 }
 0x5d8   : > { %v1426_v49 = vpop.f32.mrb[20].mxu0 }
 0x5d9   : > { %v2128_v50 = vpop.f32.mrb[21].mxu0  ;;  %v1487_v54 = vsel %vm790_vm1, %v1426_v49, 0.0 }
 0x5da   : > { %v1429_v51 = vpop.f32.mrb[22].mxu0 }
 0x5db   : > { %v2129_v52 = vpop.f32.mrb[23].mxu0 }
 0x5dc   : > { %v1481_v53 = vpop.f32.mrb[20].mxu1 }
 0x5dd   : > { %v1488_v55 = vsel %vm790_vm1, %v1481_v53, 0.0  ;;  %v2136_v57 = vpop.f32.mrb[21].mxu1 }
 0x5de   : > { %v1489_v58 = vadd.f32 %v1488_v55, %v1487_v54  ;;  %v1484_v59 = vpop.f32.mrb[22].mxu1 }
 0x5df   : > { %v2137_v60 = vpop.f32.mrb[23].mxu1 }
 0x5e0   : > { %v1497_v61 = vadd.f32 %v1987_v56, %v1489_v58 }
 0x5e2   : > { %v1498_v62 = vadd.f32 %v1497_v61, %v3140_v5  ;;  %v2302_v5 = vld [vmem:[%s3370_s14] sm:$0xff]  }
 0x5e3   : > { %2147 = vmatpush3.bf16.msra.mxu1 %v2302_v5 }
 0x5e4   : > { %v1501_v63 = vsel %vm790_vm1, %v1498_v62, 0.0  ;;  %2148 = vmatprep.subr.bf16.mxu1 %v2678_v0 }
 0x5e5   : > { %1502 = vadd.xlane.f32.xlu0 %v1501_v63 }
 0x5e7   : > { %2149 = vmatpush3.bf16.msra.mxu1 %v2303_v9 }
 0x5e8   : > { %2150 = vmatprep.subr.bf16.mxu1 %v2678_v0 }
 0x5eb   : > { %2151 = vmatpush3.bf16.msra.mxu1 %v2304_v20 }
 0x5ec   : > { %2152 = vmatprep.subr.bf16.mxu1 %v2678_v0  ;;  %v1994_v0 = vld [vmem:[%s3445_s25] ss:$0 sm:$0xff] }
 0x5ef   : > { %2153 = vmatpush3.bf16.msra.mxu1 %v2305_v21 }
 0x672   : > { %v1503_v1 = vpop.xlane.xlu0 %1502 }
 0x673   : > { %v1505_v2 = vmul.f32 0.03125, %v1503_v1 }
 0x675   : > { %v1506_v3 = vsub.f32 %v1498_v62, %v1505_v2 }
 0x677   : > { %v1507_v4 = vmul.f32 %v1506_v3, %v1506_v3 }
 0x679   : > { %v1508_v6 = vsel %vm790_vm1, %v1507_v4, 0.0 }
 0x67a   : > { %1509 = vadd.xlane.f32.xlu1 %v1508_v6 }
 0x707   : > { %v1510_v10 = vpop.xlane.xlu1 %1509 }
 0x708   : > { %v1511_v11 = vmul.f32 0.03125, %v1510_v10 }
 0x70a   : > { %v1512_v12 = vadd.f32 1e-05, %v1511_v11 }
 0x70c   : > { %2314 = vrsqrt.f32 %v1512_v12 }
 0x716   : > { %v2315_v13 = vpop.eup %2314 }
 0x717   : > { %v1514_v15 = vmul.f32 %v2315_v13, %v1506_v3 }
 0x719   : > { %v1521_v17 = vmul.f32 %v1988_v14, %v1514_v15 }
 0x71b   : > { %v1528_v18 = vadd.f32 %v1989_v16, %v1521_v17 }
 0x71d   : > { %v1529_v19 = vpack.c.bf16 %v1528_v18, %v1528_v18 }
 0x71f   : > { %2143 = vmatmul.mubr.msk.bf16.vlgmr.msra.gmra.mrb[24].mxu0 %vm790_vm1, %v1529_v19 }
 0x7f2   : > { %v1590_v23 = vpop.f32.mrb[24].mxu0 }
 0x7f3   : > { %v1591_v24 = vadd.f32 %v1990_v22, %v1590_v23  ;;  %v2144_v25 = vpop.f32.mrb[25].mxu0 }
 0x7f4   : > { %v1593_v26 = vpop.f32.mrb[26].mxu0 }
 0x7f5   : > { %v1596_v27 = vmax.f32 %v1591_v24, 0.0  ;;  %v2145_v28 = vpop.f32.mrb[27].mxu0 }
 0x7f7   : > { %v1597_v29 = vpack.c.bf16 %v1596_v27, %v1596_v27 }
 0x7f9   : > { %2155 = vmatmul.mubr.msk.bf16.vlgmr.msra.gmra.mrb[24].mxu1 %vm1637_vm6, %v1597_v29 }
 0x8cc   : > { %v1675_v30 = vpop.f32.mrb[24].mxu1 }
 0x8cd   : > { %v1676_v31 = vadd.f32 %v1994_v0, %v1675_v30  ;;  %v2156_v32 = vpop.f32.mrb[25].mxu1 }
 0x8ce   : > { %v1678_v33 = vpop.f32.mrb[26].mxu1 }
 0x8cf   : > { %v2157_v34 = vpop.f32.mrb[27].mxu1  ;;  %v1681_v35 = vadd.f32 %v1676_v31, %v1528_v18 }
 0x8d1   : > { %v1684_v36 = vsel %vm790_vm1, %v1681_v35, 0.0 }
 0x8d2   : > { %1685 = vadd.xlane.f32.xlu0 %v1684_v36 }
 0x95f   : > { %v1686_v37 = vpop.xlane.xlu0 %1685 }
 0x960   : > { %v1687_v38 = vmul.f32 0.03125, %v1686_v37 }
 0x962   : > { %v1688_v39 = vsub.f32 %v1681_v35, %v1687_v38 }
 0x964   : > { %v1689_v40 = vmul.f32 %v1688_v39, %v1688_v39 }
 0x966   : > { %v1690_v41 = vsel %vm790_vm1, %v1689_v40, 0.0 }
 0x967   : > { %1691 = vadd.xlane.f32.xlu1 %v1690_v41 }
 0x968   : > { %2559 = shalt.err (!%p2556_p8)
}
 0x969   : > { %s2560_s7 = scalar_lea.hbm %s3271_s3, 256  ;;  %s2564_s15 = scalar_lea.hbm %s3446_s11, 512 }
 0x96a   : > { %p2561_p5 = scmp.ne.s32.totalorder %s3271_s3, %s2560_s7  ;;  %p2565_p11 = scmp.lt.u32.totalorder %s3271_s3, %s3446_s11 }
 0x96b   : > { %p2566_p12 = scmp.lt.u32.totalorder %s2564_s15, %s2560_s7  ;;  %p2568_p7 = scmp.lt.u32.totalorder %s2560_s7, %s3271_s3 }
 0x96c   : > { %p2562_p10 = pnand %p2561_p5, %p3447_p9 }
 0x96d   : > { %p2567_p13 = por %p2566_p12, %p2565_p11 }
 0x96e   : > { %p2563_p1 = pneg %p2562_p10 }
 0x96f   : > { %p2569_p0 = por %p2568_p7, %p2567_p13 }
 0x971   : > { %p2570_p2 = pnand %p2569_p0, %p2563_p1 }
 0x973   : > { %2573 = shalt.err (!%p2570_p2)
}
 0x974   : > { %s2682_s9 = smov 128   ;;  %s2683_s16 = smov 8  }
 0x975   : > { %2187 = dma.vmem_to_hbm [thread:$0]  (%p3447_p9), %s3273_s8, 256, %s3271_s3, %s1718_s5, %s2682_s9, %s2682_s9, %s2683_s16  }
 0x976   : > { %s3448_s25 = sld [smem:[#allocation41_spill]]  ;;  %s3449_s4 = sld [smem:[#allocation42_spill]] }
 0x977   : > { %s2004_s23 = sshll.u32 %s2806_s2, 7  ;;  %s743_s6 = scalar_lea.vmem [#allocation16], %s1943_s19 }
 0x978   : > { %s1731_s8 = sshll.u32 %s743_s6, 4  ;;  %s3450_s9 = sld [smem:[#allocation43_spill]]  ;;  %s3313_s8 = int_to_ptr.vmem [resolvable:$true] %s1731_s8 }
 0x979   : > { %s1713_s29 = scalar_lea.sflag [#allocation4], %s3083_s12  ;;  %s2574_s7 = scalar_lea.vmem %s3313_s8, 128 }
 0x97a   : > { %p2575_p3 = scmp.ne.s32.totalorder %s3313_s8, %s2574_s7  ;;  %s2684_s2 = smov [#allocation16]  }
 0x97b   : > { %s2578_s19 = sshll.u32 %s2684_s2, 4  ;;  %s2579_s19 = int_to_ptr.vmem [resolvable:$false] %s2578_s19 }
 0x97c   : > { %v2000_v46 = vld [vmem:[%s3448_s25] ss:$0 sm:$0xff]  ;;  %p2576_p6 = pnand %p2575_p3, %p3447_p9  ;;  %s2580_s25 = scalar_lea.vmem %s2579_s19, 256 }
 0x97d   : > { %v2001_v48 = vld [vmem:[%s3449_s4] ss:$0 sm:$0xff]  ;;  %p2581_p8 = scmp.lt.s32.totalorder %s3313_s8, %s2579_s19  ;;  %p2582_p5 = scmp.lt.s32.totalorder %s2580_s25, %s2574_s7 }
 0x97e   : > { %s3311_s16 = scalar_lea.hbm %s3450_s9, %s2004_s23  ;;  %p2577_p4 = pneg %p2576_p6 }
 0x97f   : > { %p2583_p10 = por %p2582_p5, %p2581_p8 }
 0x981   : > { %p2584_p1 = pnand %p2583_p10, %p2577_p4 }
 0x9f4   : > { %v1692_v42 = vpop.xlane.xlu1 %1691 }
 0x9f5   : > { %v1693_v43 = vmul.f32 0.03125, %v1692_v42 }
 0x9f7   : > { %v1694_v44 = vadd.f32 1e-05, %v1693_v43 }
 0x9f9   : > { %2316 = vrsqrt.f32 %v1694_v44 }
 0xa03   : > { %v2317_v45 = vpop.eup %2316 }
 0xa04   : > { %v1696_v47 = vmul.f32 %v2317_v45, %v1688_v39 }
 0xa06   : > { %v1703_v49 = vmul.f32 %v2000_v46, %v1696_v47 }
 0xa08   : > { %v1710_v50 = vadd.f32 %v2001_v48, %v1703_v49 }
 0xa0a   : > { %1711 = vst.msk [vmem:[%s743_s6] sm:$0xff] %vm790_vm1, %v1710_v50 }
 0xa0b   : > { %2587 = shalt.err (!%p2584_p1)
}
 0xa0c   : > { %s2588_s6 = scalar_lea.hbm %s3311_s16, 128  ;;  %s2592_s15 = scalar_lea.hbm %s3450_s9, 256 }
 0xa0d   : > { %p2589_p11 = scmp.ne.s32.totalorder %s3311_s16, %s2588_s6  ;;  %p2593_p7 = scmp.lt.u32.totalorder %s3311_s16, %s3450_s9 }
 0xa0e   : > { %p2594_p0 = scmp.lt.u32.totalorder %s2592_s15, %s2588_s6  ;;  %p2596_p3 = scmp.lt.u32.totalorder %s2588_s6, %s3311_s16 }
 0xa0f   : > { %p2590_p12 = pnand %p2589_p11, %p3447_p9 }
 0xa10   : > { %p2595_p2 = por %p2594_p0, %p2593_p7 }
 0xa11   : > { %p2591_p13 = pneg %p2590_p12 }
 0xa12   : > { %p2597_p6 = por %p2596_p3, %p2595_p2 }
 0xa14   : > { %p2598_p4 = pnand %p2597_p6, %p2591_p13 }
 0xa16   : > { %2601 = shalt.err (!%p2598_p4)
}
 0xa17   : > { %2186 = dma.vmem_to_hbm [thread:$0]  (%p3447_p9), %s3313_s8, 128, %s3311_s16, %s1713_s29  }
 0xa18 PF: > { %s1759_s3 = sand.u32 1, %s2652_s0   ;;  %p3451_p8 = scmp.ne.s32.totalorder %s3424_s22, 0 }
 0xa19   : > { %p3452_p5 = scmp.ge.s32.totalorder %s2664_s21, 2  ;;  %s1760_s5 = scalar_lea.sflag [#allocation4], %s1759_s3 }
 0xa1b   : > { %p2217_p10 = pnand %p3452_p5, %p3451_p8 }
 0xa1d   : > { %2643 = dma.done.wait (!%p2217_p10), %s1760_s5, 128  }
 0xa1e   : > { %2645 = vsyncadd (!%p2217_p10), %s1760_s5, 4294967168  ;;  %s1769_s7 = scalar_lea.sflag [#allocation18], %s1759_s3 }
 0xa1f   : > { %2647 = dma.done.wait (!%p2217_p10), %s1769_s7, 256  }
 0xa20   : > { %2649 = vsyncadd (!%p2217_p10), %s1769_s7, 4294967040  ;;  %p42_p9 = scmp.ge.s32.totalorder %s2972_s24, 4   ;;  %s3453_s0 = smov %s2656_s30 }
 0xa21   : > { %s3454_s30 = smov %s2660_s20  ;;  %s3455_s20 = smov %s2983_s1 }
 0xa22   : > { %s3456_s21 = smov %s2972_s24  ;;  %44 = sbr.rel (!%p42_p9) target bundleno = 31 (0x1f), region = 191 }
 0xa29   :  { %1774 = vsyncpa [#allocation3], 1 }
 0xa2a   :  { %1776 = vsyncpa [#allocation3 + $0x1], 1 }
 0xa2b   :  { %1777 = vsyncpa [#allocation6], 1 }
 0xa2c   :  { %1779 = vsyncpa [#allocation6 + $0x1], 1 }
 0xa2d   :  { %1780 = vsyncpa [#allocation9], 1 }
 0xa2e   :  { %1781 = vsyncpa [#allocation12], 1 }
 0xa2f   :  { %1782 = vsyncpa [#allocation15], 1 }
 0xa30   :  { %1783 = vsyncpa [#allocation4], 1 }
 0xa31   :  { %1785 = vsyncpa [#allocation4 + $0x1], 1 }
 0xa32   :  { %1786 = vsyncpa [#allocation18], 1 }
 0xa33   :  { %1788 = vsyncpa [#allocation18 + $0x1], 1 }

</bundles_post_ra>
